<compile_context>
chip_gen: v5e
topology: v5e:2x2
jax: 0.10.0
libtpu: 0.0.40
codegen_flags: <defaults>
</compile_context>

<pallas_src>
import jax
import jax.numpy as jnp
from jax.experimental import pallas as pl
from jax.experimental.pallas import tpu as pltpu
from jax.scipy.linalg import block_diag


def _round_up(x: int, m: int) -> int:
    return (x + m - 1) // m * m


def _cdiv(a: int, b: int) -> int:
    return (a + b - 1) // b


def _softplus(x):
    # PyTorch nn.Softplus: beta=1, threshold=20 -> x if x > 20 else log1p(exp(x)).
    # exp() overflow in the non-selected lane is harmless (discarded by the where).
    thr = jnp.asarray(20.0, x.dtype)
    return jnp.where(x > thr, x, jnp.log1p(jnp.exp(x)))


def _use_bf16_softplus() -> bool:
    """bf16 EUP/VPU exists on v6e/v7x only; keep transcendental math in f32 elsewhere (v5e...)."""
    try:
        kind = jax.devices()[0].device_kind.lower()
    except Exception:
        return False
    return ("v6" in kind) or ("v7" in kind) or ("tpu7" in kind)


# ----------------------------------------------------------------------------------------------
# One-time weight fusion + packing (hoisted out of the per-call path).
# ----------------------------------------------------------------------------------------------

def _fuse_layers(head_params, shared_params, head_names):
    """Fuse per-head MLPs into block-diagonal layers and fold the head-sum into the first
    shared layer.  Returns a list of (W[in,out], b[out]) for the whole fused network."""
    depths = {len(head_params[n]) for n in head_names}
    assert len(depths) == 1, "block-diagonal head fusion requires equal head depth"
    n_head_layers = depths.pop()
    n_heads = len(head_names)

    fused = []
    for l in range(n_head_layers):
        ws = [head_params[n][l][0] for n in head_names]
        bs = [head_params[n][l][1].reshape(-1) for n in head_names]
        fused.append((block_diag(*ws), jnp.concatenate(bs, axis=0)))

    # Fold "sum over heads" into the first shared layer: concat(y_h) @ vstack([W]*H) + b.
    w0, b0 = shared_params[0]
    fused.append((jnp.concatenate([w0] * n_heads, axis=0), b0.reshape(-1)))
    for (w, b) in shared_params[1:]:
        fused.append((w, b.reshape(-1)))
    return fused


def _pack_weight_buffer(fused_layers, dtype=jnp.bfloat16):
    """Pack every (W, b) into ONE buffer using greedy 128-lane column-band shelf packing.
    Each layer exclusively owns a rows [w_row, w_row+in_pad+8) x cols [c_off, c_off+out_pad)
    rectangle (weight block + an 8-row bias slot), so zero padding rows/cols are guaranteed.
    All offsets / padded dims are static Python ints baked into the unrolled kernel loop."""
    BAND = 128
    dims = []
    for (w, _b) in fused_layers:
        d_in, d_out = w.shape
        dims.append((d_in, d_out, _round_up(d_in, BAND), _round_up(d_out, BAND)))
    width = max(op for (_, _, _, op) in dims)
    n_bands = width // BAND

    # Place widest layers first so the 128-wide layers fill leftover bands.
    order = sorted(range(len(dims)), key=lambda i: (-dims[i][3], -dims[i][2]))
    band_top = [0] * n_bands
    place = [None] * len(dims)
    for i in order:
        _d_in, _d_out, in_pad, out_pad = dims[i]
        nb = out_pad // BAND
        best_s, best_row = 0, None
        for s in range(n_bands - nb + 1):
            row = max(band_top[s:s + nb])
            if best_row is None or row < best_row:
                best_row, best_s = row, s
        w_row, b_row = best_row, best_row + in_pad
        for s in range(best_s, best_s + nb):
            band_top[s] = b_row + 8          # 8-row bias slot keeps every offset sublane-aligned
        place[i] = (w_row, b_row, best_s * BAND, in_pad, out_pad)

    rows = _round_up(max(band_top), 8)
    buf = jnp.zeros((rows, width), jnp.float32)
    for (w, b), (w_row, b_row, c_off, _ip, _op), (d_in, d_out, _, _) in zip(fused_layers, place, dims):
        buf = buf.at[w_row:w_row + d_in, c_off:c_off + d_out].set(w.astype(jnp.float32))
        buf = buf.at[b_row, c_off:c_off + d_out].set(b.astype(jnp.float32))
    return buf.astype(dtype), tuple(place)


# ----------------------------------------------------------------------------------------------
# Kernel
# ----------------------------------------------------------------------------------------------

def _make_kernel(layer_meta, bf16_softplus: bool):
    last = len(layer_meta) - 1

    def kernel(x_ref, w_ref, o_ref):
        y = x_ref[...]                                           # (TB, 128) bf16, lane-dense
        for idx, (w_row, b_row, c_off, in_pad, out_pad) in enumerate(layer_meta):
            w = w_ref[w_row:w_row + in_pad, c_off:c_off + out_pad]       # static, tile-aligned
            b = w_ref[b_row:b_row + 1, c_off:c_off + out_pad].astype(jnp.float32)
            z = jnp.dot(y, w, preferred_element_type=jnp.float32) + b   # bf16 MXU, f32 accum
            if idx == last:
                o_ref[...] = _softplus(z)                        # final softplus + store in f32
            elif bf16_softplus:
                y = _softplus(z.astype(jnp.bfloat16))            # bf16 EUP path (v6e/v7x)
            else:
                y = _softplus(z).astype(jnp.bfloat16)            # f32 EUP path (v5e & older)

    return kernel


# ----------------------------------------------------------------------------------------------
# Wrapper: pack once, call many times.
# ----------------------------------------------------------------------------------------------

class MultiHeadMLPPallas:
    """Forward-pass of MultiHeadMLP.  Weight fusion/packing happens once at construction."""

    def __init__(self, params, batch_tile: int = 1024, single_buffer_weights: bool = True):
        self.head_names = sorted(n for n in params if n != "shared")
        fused = _fuse_layers({n: params[n] for n in self.head_names},
                             params["shared"], self.head_names)
        self.wbuf, self.layer_meta = _pack_weight_buffer(fused, dtype=jnp.bfloat16)

        self.in_dim = int(fused[0][0].shape[0])
        self.out_dim = int(fused[-1][0].shape[1])
        self.in_pad0 = self.layer_meta[0][3]
        self.out_pad_last = self.layer_meta[-1][4]
        # Layer chaining invariant (padded widths line up so y can feed the next matmul).
        for l in range(len(self.layer_meta) - 1):
            assert self.layer_meta[l][4] == self.layer_meta[l + 1][3]

        self.batch_tile = max(8, (int(batch_tile) // 8) * 8)     # force multiple of 8
        self.single_buffer_weights = single_buffer_weights
        self._single_buffer_ok = None                            # learned on first call
        self._kernel = _make_kernel(self.layer_meta, _use_bf16_softplus())

    # -- internal -------------------------------------------------------------------------------
    def _build_call(self, tb, batch_pad, vmem_limit, cost, single_buffer):
        if single_buffer:
            # Constant index_map -> weights stay resident; one pipeline buffer is enough.
            w_spec = pl.BlockSpec(self.wbuf.shape, lambda i: (0, 0),
                                  pipeline_mode=pl.Buffered(1))
        else:
            w_spec = pl.BlockSpec(self.wbuf.shape, lambda i: (0, 0))
        return pl.pallas_call(
            self._kernel,
            out_shape=jax.ShapeDtypeStruct((batch_pad, self.out_pad_last), jnp.float32),
            grid=(batch_pad // tb,),
            in_specs=[pl.BlockSpec((tb, self.in_pad0), lambda i: (i, 0)), w_spec],
            out_specs=pl.BlockSpec((tb, self.out_pad_last), lambda i: (i, 0)),
            compiler_params=pltpu.CompilerParams(
                dimension_semantics=("parallel",),
                vmem_limit_bytes=vmem_limit),
            cost_estimate=cost,
        )

    # -- forward --------------------------------------------------------------------------------
    def __call__(self, inputs):
        """inputs: {head_name: [batch, head_in]} -> [batch, output_size] float32."""
        x = jnp.concatenate([inputs[n] for n in self.head_names], axis=1).astype(jnp.bfloat16)
        batch = x.shape[0]

        # Tile selection: multiple of 8, minimal padding, >=2 tiles at large batch so both
        # v7x TensorCores are used (harmless single extra grid step on 1-TC chips).
        n_tiles = max(1, _cdiv(batch, self.batch_tile))
        if n_tiles < 2 and batch >= 256:
            n_tiles = 2
        tb = _round_up(_cdiv(batch, n_tiles), 8)
        batch_pad = tb * n_tiles

        x = jnp.pad(x, ((0, batch_pad - batch), (0, self.in_pad0 - self.in_dim)))

        # Scoped-VMEM budget from the actual working set (2x headroom), not a fixed 32 MiB.
        width = int(self.wbuf.shape[1])
        est = (2 * tb * self.in_pad0 * 2          # bf16 input tiles (double-buffered)
               + 2 * tb * self.out_pad_last * 4   # f32 output tiles (double-buffered)
               + 2 * int(self.wbuf.size) * 2      # bf16 weights (assume double-buffered)
               + 6 * tb * width * 4)              # f32 activation temporaries (generous)
        vmem_limit = int(min(40 << 20, max(8 << 20, 2 * est)))

        flops = 2 * batch_pad * sum(ip * op for (_, _, _, ip, op) in self.layer_meta)
        transc = 2 * batch_pad * sum(op for (_, _, _, _, op) in self.layer_meta)
        bytes_acc = (2 * batch_pad * self.in_pad0 + 2 * int(self.wbuf.size)
                     + 4 * batch_pad * self.out_pad_last)
        cost = pl.CostEstimate(flops=flops, transcendentals=transc, bytes_accessed=bytes_acc)

        want_single = self.single_buffer_weights and self._single_buffer_ok is not False
        if want_single:
            try:
                out = self._build_call(tb, batch_pad, vmem_limit, cost, True)(x, self.wbuf)
                self._single_buffer_ok = True
            except Exception:
                # pipeline_mode / Buffered(1) unsupported on this JAX build -> default pipelining.
                self._single_buffer_ok = False
                out = self._build_call(tb, batch_pad, vmem_limit, cost, False)(x, self.wbuf)
        else:
            out = self._build_call(tb, batch_pad, vmem_limit, cost, False)(x, self.wbuf)

        return out[:batch, :self.out_dim]


# ----------------------------------------------------------------------------------------------
# Reference + demo
# ----------------------------------------------------------------------------------------------

def _init_mlp_params(key, layer_sizes, in_size):
    """Mirrors MLP.weights_init: W ~ N(0, sqrt(1/out_features)), bias = 0.
    Returns list of (W[in,out], b[1,out]) pairs (W stored transposed vs PyTorch)."""
    layers = []
    prev = in_size
    for size in layer_sizes:
        key, sub = jax.random.split(key)
        w_pt = jax.random.normal(sub, (size, prev), dtype=jnp.float32) * (1.0 / size) ** 0.5
        layers.append((w_pt.T, jnp.zeros((1, size), jnp.float32)))
        prev = size
    return layers


def _reference_forward(inputs, params):
    """Pure-JAX f32 reference of the same math (also validates the fusion/packing)."""
    def softplus_f32(x):
        return jnp.where(x > 20.0, x, jnp.log1p(jnp.exp(x)))

    def run_mlp(x, layers):
        for (w, b) in layers:
            x = softplus_f32(jnp.dot(x, w, precision=jax.lax.Precision.HIGHEST) + b)
        return x

    combined = 0.0
    for name in sorted(inputs.keys()):
        combined = combined + run_mlp(inputs[name], params[name])
    return run_mlp(combined, params["shared"])


if __name__ == "__main__":
    # Module defaults: two heads, each MLP 10 -> 100 -> 50 -> 150 (input_size),
    # shared MLP 150 -> 25 -> 15 -> 10 -> 10 (output_size), Softplus after every Linear.
    independent_layers = {"input_1": ((100, 50), 10), "input_2": ((100, 50), 10)}
    shared_layer_sizes = (25, 15, 10)
    input_size = 150
    output_size = 10
    batch = 4

    master = jax.random.PRNGKey(0)
    k_params, k_data = jax.random.split(master)

    params = {}
    pkeys = jax.random.split(k_params, len(independent_layers) + 1)
    for i, (name, (sizes, head_in)) in enumerate(sorted(independent_layers.items())):
        params[name] = _init_mlp_params(pkeys[i], sizes + (input_size,), head_in)
    params["shared"] = _init_mlp_params(pkeys[-1], shared_layer_sizes + (output_size,), input_size)

    dkeys = jax.random.split(k_data, len(independent_layers))
    inputs = {
        name: jax.random.normal(dkeys[i], (batch, head_in), dtype=jnp.float32)
        for i, (name, (_, head_in)) in enumerate(sorted(independent_layers.items()))
    }

    model = MultiHeadMLPPallas(params)            # fuse + pack weights ONCE (not per forward)
    out = jax.block_until_ready(model(inputs))
    out2 = jax.block_until_ready(model(inputs))   # second call reuses the packed buffer

    ref = _reference_forward(inputs, params)
    assert out.shape == (batch, output_size), out.shape
    max_err = float(jnp.max(jnp.abs(out - ref)))
    # bf16 weights/activations on the MXU -> relaxed tolerance vs the f32 reference.
    assert jnp.allclose(out, ref, rtol=5e-2, atol=5e-2), f"mismatch vs reference (max err {max_err})"
    assert jnp.allclose(out, out2), "non-deterministic output across calls"

    print("KERNEL_OK")
</pallas_src>

<mosaic_0001>
module attributes {stable_mosaic.version = 11 : i64} {
  func.func @kernel(%arg0: i32, %arg1: memref<8x128xbf16, #tpu.memory_space<vmem>>, %arg2: memref<664x384xbf16, #tpu.memory_space<vmem>>, %arg3: memref<8x128xf32, #tpu.memory_space<vmem>>) attributes {dimension_semantics = [#tpu.dimension_semantics<parallel>], iteration_bounds = array<i64: 1>, scalar_prefetch = 0 : i64, scratch_operands = 0 : i64, tpu.core_type = #tpu.core_type<tc>, window_params = [{transform_indices = @transform_0, window_bounds = array<i64: 8, 128>}, {pipeline_mode = #tpu.pipeline_mode<synchronous>, transform_indices = @transform_1, window_bounds = array<i64: 664, 384>}, {transform_indices = @transform_2, window_bounds = array<i64: 8, 128>}]} {
    %c0 = arith.constant 0 : index
    %c0_0 = arith.constant 0 : index
    %0 = vector.load %arg1[%c0, %c0_0] : memref<8x128xbf16, #tpu.memory_space<vmem>>, vector<8x128xbf16>
    %c136 = arith.constant 136 : index
    %c0_1 = arith.constant 0 : index
    %1 = vector.load %arg2[%c136, %c0_1] : memref<664x384xbf16, #tpu.memory_space<vmem>>, vector<128x256xbf16>
    %c264 = arith.constant 264 : index
    %c0_2 = arith.constant 0 : index
    %2 = vector.load %arg2[%c264, %c0_2] : memref<664x384xbf16, #tpu.memory_space<vmem>>, vector<1x256xbf16>
    %3 = arith.extf %2 : vector<1x256xbf16> to vector<1x256xf32>
    %cst = arith.constant dense<0.000000e+00> : vector<8x256xf32>
    %4 = tpu.matmul %0, %1, %cst {dimension_numbers = #tpu.dot_dimension_numbers<[1], [0], [0], [1], [0, 0, 1, 1], [], []>} : vector<8x128xbf16>, vector<128x256xbf16>, vector<8x256xf32> -> vector<8x256xf32>
    %5 = vector.broadcast %3 : vector<1x256xf32> to vector<8x256xf32>
    %6 = arith.addf %4, %5 : vector<8x256xf32>
    %cst_3 = arith.constant 2.000000e+01 : f32
    %7 = vector.broadcast %cst_3 : f32 to vector<8x256xf32>
    %8 = arith.cmpf ogt, %6, %7 : vector<8x256xf32>
    %9 = math.exp %6 : vector<8x256xf32>
    %10 = math.log1p %9 : vector<8x256xf32>
    %11 = arith.select %8, %6, %10 : vector<8x256xi1>, vector<8x256xf32>
    %12 = arith.truncf %11 : vector<8x256xf32> to vector<8x256xbf16>
    %c272 = arith.constant 272 : index
    %c0_4 = arith.constant 0 : index
    %13 = vector.load %arg2[%c272, %c0_4] : memref<664x384xbf16, #tpu.memory_space<vmem>>, vector<256x128xbf16>
    %c528 = arith.constant 528 : index
    %c0_5 = arith.constant 0 : index
    %14 = vector.load %arg2[%c528, %c0_5] : memref<664x384xbf16, #tpu.memory_space<vmem>>, vector<1x128xbf16>
    %15 = arith.extf %14 : vector<1x128xbf16> to vector<1x128xf32>
    %cst_6 = arith.constant dense<0.000000e+00> : vector<8x128xf32>
    %16 = tpu.matmul %12, %13, %cst_6 {dimension_numbers = #tpu.dot_dimension_numbers<[1], [0], [0], [1], [0, 0, 1, 1], [], []>} : vector<8x256xbf16>, vector<256x128xbf16>, vector<8x128xf32> -> vector<8x128xf32>
    %17 = vector.broadcast %15 : vector<1x128xf32> to vector<8x128xf32>
    %18 = arith.addf %16, %17 : vector<8x128xf32>
    %cst_7 = arith.constant 2.000000e+01 : f32
    %19 = vector.broadcast %cst_7 : f32 to vector<8x128xf32>
    %20 = arith.cmpf ogt, %18, %19 : vector<8x128xf32>
    %21 = math.exp %18 : vector<8x128xf32>
    %22 = math.log1p %21 : vector<8x128xf32>
    %23 = arith.select %20, %18, %22 : vector<8x128xi1>, vector<8x128xf32>
    %24 = arith.truncf %23 : vector<8x128xf32> to vector<8x128xbf16>
    %c0_8 = arith.constant 0 : index
    %c0_9 = arith.constant 0 : index
    %25 = vector.load %arg2[%c0_8, %c0_9] : memref<664x384xbf16, #tpu.memory_space<vmem>>, vector<128x384xbf16>
    %c128 = arith.constant 128 : index
    %c0_10 = arith.constant 0 : index
    %26 = vector.load %arg2[%c128, %c0_10] : memref<664x384xbf16, #tpu.memory_space<vmem>>, vector<1x384xbf16>
    %27 = arith.extf %26 : vector<1x384xbf16> to vector<1x384xf32>
    %cst_11 = arith.constant dense<0.000000e+00> : vector<8x384xf32>
    %28 = tpu.matmul %24, %25, %cst_11 {dimension_numbers = #tpu.dot_dimension_numbers<[1], [0], [0], [1], [0, 0, 1, 1], [], []>} : vector<8x128xbf16>, vector<128x384xbf16>, vector<8x384xf32> -> vector<8x384xf32>
    %29 = vector.broadcast %27 : vector<1x384xf32> to vector<8x384xf32>
    %30 = arith.addf %28, %29 : vector<8x384xf32>
    %cst_12 = arith.constant 2.000000e+01 : f32
    %31 = vector.broadcast %cst_12 : f32 to vector<8x384xf32>
    %32 = arith.cmpf ogt, %30, %31 : vector<8x384xf32>
    %33 = math.exp %30 : vector<8x384xf32>
    %34 = math.log1p %33 : vector<8x384xf32>
    %35 = arith.select %32, %30, %34 : vector<8x384xi1>, vector<8x384xf32>
    %36 = arith.truncf %35 : vector<8x384xf32> to vector<8x384xbf16>
    %c136_13 = arith.constant 136 : index
    %c256 = arith.constant 256 : index
    %37 = vector.load %arg2[%c136_13, %c256] : memref<664x384xbf16, #tpu.memory_space<vmem>>, vector<384x128xbf16>
    %c520 = arith.constant 520 : index
    %c256_14 = arith.constant 256 : index
    %38 = vector.load %arg2[%c520, %c256_14] : memref<664x384xbf16, #tpu.memory_space<vmem>>, vector<1x128xbf16>
    %39 = arith.extf %38 : vector<1x128xbf16> to vector<1x128xf32>
    %cst_15 = arith.constant dense<0.000000e+00> : vector<8x128xf32>
    %40 = tpu.matmul %36, %37, %cst_15 {dimension_numbers = #tpu.dot_dimension_numbers<[1], [0], [0], [1], [0, 0, 1, 1], [], []>} : vector<8x384xbf16>, vector<384x128xbf16>, vector<8x128xf32> -> vector<8x128xf32>
    %41 = vector.broadcast %39 : vector<1x128xf32> to vector<8x128xf32>
    %42 = arith.addf %40, %41 : vector<8x128xf32>
    %cst_16 = arith.constant 2.000000e+01 : f32
    %43 = vector.broadcast %cst_16 : f32 to vector<8x128xf32>
    %44 = arith.cmpf ogt, %42, %43 : vector<8x128xf32>
    %45 = math.exp %42 : vector<8x128xf32>
    %46 = math.log1p %45 : vector<8x128xf32>
    %47 = arith.select %44, %42, %46 : vector<8x128xi1>, vector<8x128xf32>
    %48 = arith.truncf %47 : vector<8x128xf32> to vector<8x128xbf16>
    %c272_17 = arith.constant 272 : index
    %c128_18 = arith.constant 128 : index
    %49 = vector.load %arg2[%c272_17, %c128_18] : memref<664x384xbf16, #tpu.memory_space<vmem>>, vector<128x128xbf16>
    %c400 = arith.constant 400 : index
    %c128_19 = arith.constant 128 : index
    %50 = vector.load %arg2[%c400, %c128_19] : memref<664x384xbf16, #tpu.memory_space<vmem>>, vector<1x128xbf16>
    %51 = arith.extf %50 : vector<1x128xbf16> to vector<1x128xf32>
    %cst_20 = arith.constant dense<0.000000e+00> : vector<8x128xf32>
    %52 = tpu.matmul %48, %49, %cst_20 {dimension_numbers = #tpu.dot_dimension_numbers<[1], [0], [0], [1], [0, 0, 1, 1], [], []>} : vector<8x128xbf16>, vector<128x128xbf16>, vector<8x128xf32> -> vector<8x128xf32>
    %53 = vector.broadcast %51 : vector<1x128xf32> to vector<8x128xf32>
    %54 = arith.addf %52, %53 : vector<8x128xf32>
    %cst_21 = arith.constant 2.000000e+01 : f32
    %55 = vector.broadcast %cst_21 : f32 to vector<8x128xf32>
    %56 = arith.cmpf ogt, %54, %55 : vector<8x128xf32>
    %57 = math.exp %54 : vector<8x128xf32>
    %58 = math.log1p %57 : vector<8x128xf32>
    %59 = arith.select %56, %54, %58 : vector<8x128xi1>, vector<8x128xf32>
    %60 = arith.truncf %59 : vector<8x128xf32> to vector<8x128xbf16>
    %c408 = arith.constant 408 : index
    %c128_22 = arith.constant 128 : index
    %61 = vector.load %arg2[%c408, %c128_22] : memref<664x384xbf16, #tpu.memory_space<vmem>>, vector<128x128xbf16>
    %c536 = arith.constant 536 : index
    %c128_23 = arith.constant 128 : index
    %62 = vector.load %arg2[%c536, %c128_23] : memref<664x384xbf16, #tpu.memory_space<vmem>>, vector<1x128xbf16>
    %63 = arith.extf %62 : vector<1x128xbf16> to vector<1x128xf32>
    %cst_24 = arith.constant dense<0.000000e+00> : vector<8x128xf32>
    %64 = tpu.matmul %60, %61, %cst_24 {dimension_numbers = #tpu.dot_dimension_numbers<[1], [0], [0], [1], [0, 0, 1, 1], [], []>} : vector<8x128xbf16>, vector<128x128xbf16>, vector<8x128xf32> -> vector<8x128xf32>
    %65 = vector.broadcast %63 : vector<1x128xf32> to vector<8x128xf32>
    %66 = arith.addf %64, %65 : vector<8x128xf32>
    %cst_25 = arith.constant 2.000000e+01 : f32
    %67 = vector.broadcast %cst_25 : f32 to vector<8x128xf32>
    %68 = arith.cmpf ogt, %66, %67 : vector<8x128xf32>
    %69 = math.exp %66 : vector<8x128xf32>
    %70 = math.log1p %69 : vector<8x128xf32>
    %71 = arith.select %68, %66, %70 : vector<8x128xi1>, vector<8x128xf32>
    %72 = arith.truncf %71 : vector<8x128xf32> to vector<8x128xbf16>
    %c528_26 = arith.constant 528 : index
    %c256_27 = arith.constant 256 : index
    %73 = vector.load %arg2[%c528_26, %c256_27] : memref<664x384xbf16, #tpu.memory_space<vmem>>, vector<128x128xbf16>
    %c656 = arith.constant 656 : index
    %c256_28 = arith.constant 256 : index
    %74 = vector.load %arg2[%c656, %c256_28] : memref<664x384xbf16, #tpu.memory_space<vmem>>, vector<1x128xbf16>
    %75 = arith.extf %74 : vector<1x128xbf16> to vector<1x128xf32>
    %cst_29 = arith.constant dense<0.000000e+00> : vector<8x128xf32>
    %76 = tpu.matmul %72, %73, %cst_29 {dimension_numbers = #tpu.dot_dimension_numbers<[1], [0], [0], [1], [0, 0, 1, 1], [], []>} : vector<8x128xbf16>, vector<128x128xbf16>, vector<8x128xf32> -> vector<8x128xf32>
    %77 = vector.broadcast %75 : vector<1x128xf32> to vector<8x128xf32>
    %78 = arith.addf %76, %77 : vector<8x128xf32>
    %cst_30 = arith.constant 2.000000e+01 : f32
    %79 = vector.broadcast %cst_30 : f32 to vector<8x128xf32>
    %80 = arith.cmpf ogt, %78, %79 : vector<8x128xf32>
    %81 = math.exp %78 : vector<8x128xf32>
    %82 = math.log1p %81 : vector<8x128xf32>
    %83 = arith.select %80, %78, %82 : vector<8x128xi1>, vector<8x128xf32>
    %c0_31 = arith.constant 0 : index
    %c0_32 = arith.constant 0 : index
    %84 = vector.load %arg3[%c0_31, %c0_32] : memref<8x128xf32, #tpu.memory_space<vmem>>, vector<8x128xf32>
    tpu.vector_store %arg3[%c0_31, %c0_32], %83 {strides = array<i32>} : memref<8x128xf32, #tpu.memory_space<vmem>>, vector<8x128xf32>,
    return
  }
  func.func @transform_0(%arg0: i32) -> (i32, i32) {
    %c0_i32 = arith.constant 0 : i32
    %c0_i32_0 = arith.constant 0 : i32
    return %arg0, %c0_i32 : i32, i32
  }
  func.func @transform_1(%arg0: i32) -> (i32, i32) {
    %c0_i32 = arith.constant 0 : i32
    %c0_i32_0 = arith.constant 0 : i32
    %c0_i32_1 = arith.constant 0 : i32
    return %c0_i32, %c0_i32_0 : i32, i32
  }
  func.func @transform_2(%arg0: i32) -> (i32, i32) {
    %c0_i32 = arith.constant 0 : i32
    %c0_i32_0 = arith.constant 0 : i32
    return %arg0, %c0_i32 : i32, i32
  }
}

module attributes {stable_mosaic.version = 11 : i64} {
  func.func @kernel(%arg0: i32, %arg1: memref<8x128xbf16, #tpu.memory_space<vmem>>, %arg2: memref<664x384xbf16, #tpu.memory_space<vmem>>, %arg3: memref<8x128xf32, #tpu.memory_space<vmem>>) attributes {dimension_semantics = [#tpu.dimension_semantics<parallel>], iteration_bounds = array<i64: 1>, scalar_prefetch = 0 : i64, scratch_operands = 0 : i64, tpu.core_type = #tpu.core_type<tc>, window_params = [{transform_indices = @transform_0, window_bounds = array<i64: 8, 128>}, {pipeline_mode = #tpu.pipeline_mode<synchronous>, transform_indices = @transform_1, window_bounds = array<i64: 664, 384>}, {transform_indices = @transform_2, window_bounds = array<i64: 8, 128>}]} {
    %c0 = arith.constant 0 : index
    %c0_0 = arith.constant 0 : index
    %0 = vector.load %arg1[%c0, %c0_0] : memref<8x128xbf16, #tpu.memory_space<vmem>>, vector<8x128xbf16>
    %c136 = arith.constant 136 : index
    %c0_1 = arith.constant 0 : index
    %1 = vector.load %arg2[%c136, %c0_1] : memref<664x384xbf16, #tpu.memory_space<vmem>>, vector<128x256xbf16>
    %c264 = arith.constant 264 : index
    %c0_2 = arith.constant 0 : index
    %2 = vector.load %arg2[%c264, %c0_2] : memref<664x384xbf16, #tpu.memory_space<vmem>>, vector<1x256xbf16>
    %3 = arith.extf %2 : vector<1x256xbf16> to vector<1x256xf32>
    %cst = arith.constant dense<0.000000e+00> : vector<8x256xf32>
    %4 = tpu.matmul %0, %1, %cst {dimension_numbers = #tpu.dot_dimension_numbers<[1], [0], [0], [1], [0, 0, 1, 1], [], []>} : vector<8x128xbf16>, vector<128x256xbf16>, vector<8x256xf32> -> vector<8x256xf32>
    %5 = vector.broadcast %3 : vector<1x256xf32> to vector<8x256xf32>
    %6 = arith.addf %4, %5 : vector<8x256xf32>
    %cst_3 = arith.constant 2.000000e+01 : f32
    %7 = vector.broadcast %cst_3 : f32 to vector<8x256xf32>
    %8 = arith.cmpf ogt, %6, %7 : vector<8x256xf32>
    %9 = math.exp %6 : vector<8x256xf32>
    %10 = math.log1p %9 : vector<8x256xf32>
    %11 = arith.select %8, %6, %10 : vector<8x256xi1>, vector<8x256xf32>
    %12 = arith.truncf %11 : vector<8x256xf32> to vector<8x256xbf16>
    %c272 = arith.constant 272 : index
    %c0_4 = arith.constant 0 : index
    %13 = vector.load %arg2[%c272, %c0_4] : memref<664x384xbf16, #tpu.memory_space<vmem>>, vector<256x128xbf16>
    %c528 = arith.constant 528 : index
    %c0_5 = arith.constant 0 : index
    %14 = vector.load %arg2[%c528, %c0_5] : memref<664x384xbf16, #tpu.memory_space<vmem>>, vector<1x128xbf16>
    %15 = arith.extf %14 : vector<1x128xbf16> to vector<1x128xf32>
    %cst_6 = arith.constant dense<0.000000e+00> : vector<8x128xf32>
    %16 = tpu.matmul %12, %13, %cst_6 {dimension_numbers = #tpu.dot_dimension_numbers<[1], [0], [0], [1], [0, 0, 1, 1], [], []>} : vector<8x256xbf16>, vector<256x128xbf16>, vector<8x128xf32> -> vector<8x128xf32>
    %17 = vector.broadcast %15 : vector<1x128xf32> to vector<8x128xf32>
    %18 = arith.addf %16, %17 : vector<8x128xf32>
    %cst_7 = arith.constant 2.000000e+01 : f32
    %19 = vector.broadcast %cst_7 : f32 to vector<8x128xf32>
    %20 = arith.cmpf ogt, %18, %19 : vector<8x128xf32>
    %21 = math.exp %18 : vector<8x128xf32>
    %22 = math.log1p %21 : vector<8x128xf32>
    %23 = arith.select %20, %18, %22 : vector<8x128xi1>, vector<8x128xf32>
    %24 = arith.truncf %23 : vector<8x128xf32> to vector<8x128xbf16>
    %c0_8 = arith.constant 0 : index
    %c0_9 = arith.constant 0 : index
    %25 = vector.load %arg2[%c0_8, %c0_9] : memref<664x384xbf16, #tpu.memory_space<vmem>>, vector<128x384xbf16>
    %c128 = arith.constant 128 : index
    %c0_10 = arith.constant 0 : index
    %26 = vector.load %arg2[%c128, %c0_10] : memref<664x384xbf16, #tpu.memory_space<vmem>>, vector<1x384xbf16>
    %27 = arith.extf %26 : vector<1x384xbf16> to vector<1x384xf32>
    %cst_11 = arith.constant dense<0.000000e+00> : vector<8x384xf32>
    %28 = tpu.matmul %24, %25, %cst_11 {dimension_numbers = #tpu.dot_dimension_numbers<[1], [0], [0], [1], [0, 0, 1, 1], [], []>} : vector<8x128xbf16>, vector<128x384xbf16>, vector<8x384xf32> -> vector<8x384xf32>
    %29 = vector.broadcast %27 : vector<1x384xf32> to vector<8x384xf32>
    %30 = arith.addf %28, %29 : vector<8x384xf32>
    %cst_12 = arith.constant 2.000000e+01 : f32
    %31 = vector.broadcast %cst_12 : f32 to vector<8x384xf32>
    %32 = arith.cmpf ogt, %30, %31 : vector<8x384xf32>
    %33 = math.exp %30 : vector<8x384xf32>
    %34 = math.log1p %33 : vector<8x384xf32>
    %35 = arith.select %32, %30, %34 : vector<8x384xi1>, vector<8x384xf32>
    %36 = arith.truncf %35 : vector<8x384xf32> to vector<8x384xbf16>
    %c136_13 = arith.constant 136 : index
    %c256 = arith.constant 256 : index
    %37 = vector.load %arg2[%c136_13, %c256] : memref<664x384xbf16, #tpu.memory_space<vmem>>, vector<384x128xbf16>
    %c520 = arith.constant 520 : index
    %c256_14 = arith.constant 256 : index
    %38 = vector.load %arg2[%c520, %c256_14] : memref<664x384xbf16, #tpu.memory_space<vmem>>, vector<1x128xbf16>
    %39 = arith.extf %38 : vector<1x128xbf16> to vector<1x128xf32>
    %cst_15 = arith.constant dense<0.000000e+00> : vector<8x128xf32>
    %40 = tpu.matmul %36, %37, %cst_15 {dimension_numbers = #tpu.dot_dimension_numbers<[1], [0], [0], [1], [0, 0, 1, 1], [], []>} : vector<8x384xbf16>, vector<384x128xbf16>, vector<8x128xf32> -> vector<8x128xf32>
    %41 = vector.broadcast %39 : vector<1x128xf32> to vector<8x128xf32>
    %42 = arith.addf %40, %41 : vector<8x128xf32>
    %cst_16 = arith.constant 2.000000e+01 : f32
    %43 = vector.broadcast %cst_16 : f32 to vector<8x128xf32>
    %44 = arith.cmpf ogt, %42, %43 : vector<8x128xf32>
    %45 = math.exp %42 : vector<8x128xf32>
    %46 = math.log1p %45 : vector<8x128xf32>
    %47 = arith.select %44, %42, %46 : vector<8x128xi1>, vector<8x128xf32>
    %48 = arith.truncf %47 : vector<8x128xf32> to vector<8x128xbf16>
    %c272_17 = arith.constant 272 : index
    %c128_18 = arith.constant 128 : index
    %49 = vector.load %arg2[%c272_17, %c128_18] : memref<664x384xbf16, #tpu.memory_space<vmem>>, vector<128x128xbf16>
    %c400 = arith.constant 400 : index
    %c128_19 = arith.constant 128 : index
    %50 = vector.load %arg2[%c400, %c128_19] : memref<664x384xbf16, #tpu.memory_space<vmem>>, vector<1x128xbf16>
    %51 = arith.extf %50 : vector<1x128xbf16> to vector<1x128xf32>
    %cst_20 = arith.constant dense<0.000000e+00> : vector<8x128xf32>
    %52 = tpu.matmul %48, %49, %cst_20 {dimension_numbers = #tpu.dot_dimension_numbers<[1], [0], [0], [1], [0, 0, 1, 1], [], []>} : vector<8x128xbf16>, vector<128x128xbf16>, vector<8x128xf32> -> vector<8x128xf32>
    %53 = vector.broadcast %51 : vector<1x128xf32> to vector<8x128xf32>
    %54 = arith.addf %52, %53 : vector<8x128xf32>
    %cst_21 = arith.constant 2.000000e+01 : f32
    %55 = vector.broadcast %cst_21 : f32 to vector<8x128xf32>
    %56 = arith.cmpf ogt, %54, %55 : vector<8x128xf32>
    %57 = math.exp %54 : vector<8x128xf32>
    %58 = math.log1p %57 : vector<8x128xf32>
    %59 = arith.select %56, %54, %58 : vector<8x128xi1>, vector<8x128xf32>
    %60 = arith.truncf %59 : vector<8x128xf32> to vector<8x128xbf16>
    %c408 = arith.constant 408 : index
    %c128_22 = arith.constant 128 : index
    %61 = vector.load %arg2[%c408, %c128_22] : memref<664x384xbf16, #tpu.memory_space<vmem>>, vector<128x128xbf16>
    %c536 = arith.constant 536 : index
    %c128_23 = arith.constant 128 : index
    %62 = vector.load %arg2[%c536, %c128_23] : memref<664x384xbf16, #tpu.memory_space<vmem>>, vector<1x128xbf16>
    %63 = arith.extf %62 : vector<1x128xbf16> to vector<1x128xf32>
    %cst_24 = arith.constant dense<0.000000e+00> : vector<8x128xf32>
    %64 = tpu.matmul %60, %61, %cst_24 {dimension_numbers = #tpu.dot_dimension_numbers<[1], [0], [0], [1], [0, 0, 1, 1], [], []>} : vector<8x128xbf16>, vector<128x128xbf16>, vector<8x128xf32> -> vector<8x128xf32>
    %65 = vector.broadcast %63 : vector<1x128xf32> to vector<8x128xf32>
    %66 = arith.addf %64, %65 : vector<8x128xf32>
    %cst_25 = arith.constant 2.000000e+01 : f32
    %67 = vector.broadcast %cst_25 : f32 to vector<8x128xf32>
    %68 = arith.cmpf ogt, %66, %67 : vector<8x128xf32>
    %69 = math.exp %66 : vector<8x128xf32>
    %70 = math.log1p %69 : vector<8x128xf32>
    %71 = arith.select %68, %66, %70 : vector<8x128xi1>, vector<8x128xf32>
    %72 = arith.truncf %71 : vector<8x128xf32> to vector<8x128xbf16>
    %c528_26 = arith.constant 528 : index
    %c256_27 = arith.constant 256 : index
    %73 = vector.load %arg2[%c528_26, %c256_27] : memref<664x384xbf16, #tpu.memory_space<vmem>>, vector<128x128xbf16>
    %c656 = arith.constant 656 : index
    %c256_28 = arith.constant 256 : index
    %74 = vector.load %arg2[%c656, %c256_28] : memref<664x384xbf16, #tpu.memory_space<vmem>>, vector<1x128xbf16>
    %75 = arith.extf %74 : vector<1x128xbf16> to vector<1x128xf32>
    %cst_29 = arith.constant dense<0.000000e+00> : vector<8x128xf32>
    %76 = tpu.matmul %72, %73, %cst_29 {dimension_numbers = #tpu.dot_dimension_numbers<[1], [0], [0], [1], [0, 0, 1, 1], [], []>} : vector<8x128xbf16>, vector<128x128xbf16>, vector<8x128xf32> -> vector<8x128xf32>
    %77 = vector.broadcast %75 : vector<1x128xf32> to vector<8x128xf32>
    %78 = arith.addf %76, %77 : vector<8x128xf32>
    %cst_30 = arith.constant 2.000000e+01 : f32
    %79 = vector.broadcast %cst_30 : f32 to vector<8x128xf32>
    %80 = arith.cmpf ogt, %78, %79 : vector<8x128xf32>
    %81 = math.exp %78 : vector<8x128xf32>
    %82 = math.log1p %81 : vector<8x128xf32>
    %83 = arith.select %80, %78, %82 : vector<8x128xi1>, vector<8x128xf32>
    %c0_31 = arith.constant 0 : index
    %c0_32 = arith.constant 0 : index
    %84 = vector.load %arg3[%c0_31, %c0_32] : memref<8x128xf32, #tpu.memory_space<vmem>>, vector<8x128xf32>
    tpu.vector_store %arg3[%c0_31, %c0_32], %83 {strides = array<i32>} : memref<8x128xf32, #tpu.memory_space<vmem>>, vector<8x128xf32>,
    return
  }
  func.func @transform_0(%arg0: i32) -> (i32, i32) {
    %c0_i32 = arith.constant 0 : i32
    %c0_i32_0 = arith.constant 0 : i32
    return %arg0, %c0_i32 : i32, i32
  }
  func.func @transform_1(%arg0: i32) -> (i32, i32) {
    %c0_i32 = arith.constant 0 : i32
    %c0_i32_0 = arith.constant 0 : i32
    %c0_i32_1 = arith.constant 0 : i32
    return %c0_i32, %c0_i32_0 : i32, i32
  }
  func.func @transform_2(%arg0: i32) -> (i32, i32) {
    %c0_i32 = arith.constant 0 : i32
    %c0_i32_0 = arith.constant 0 : i32
    return %arg0, %c0_i32 : i32, i32
  }
}

</mosaic_0001>

<bundles_post_ra>
// kernel: tpu_custom_call.1
= control target key start
LH: loop header
LB: loop body
LE: loop exit
PB: predicated region body
PF: predicated region fallthrough
CT: control target
= control target key end

     0   :  { %7 = vsyncpa [#allocation3], 0  ;;  %s1838_s0 = inlined_call_operand.hbm [shape: bf16[8,128], index: 0, kind: input, shape index: {}]   ;;  %s1839_s1 = inlined_call_operand.hbm [shape: bf16[664,384], index: 1, kind: input, shape index: {}]   ;;  %s1840_s2 = inlined_call_operand.hbm [shape: f32[8,128], index: 2, kind: output, shape index: {}]  }
   0x1   :  { %8 = vsyncpa [#allocation6], 0 }
   0x2   :  { %9 = vsyncpa [#allocation4], 0  ;;  %s15_s11 = sshll.u32 %s1838_s0, 4  ;;  %s1809_s12 = smov [#allocation2]   ;;  %s16_s11 = int_to_ptr.hbm [resolvable:$true] %s15_s11 }
   0x3   :  { %s17_s13 = sshll.u32 %s1809_s12, 4  ;;  %s25_s16 = sshll.u32 %s1839_s1, 4  ;;  %s18_s13 = int_to_ptr.vmem [resolvable:$true] %s17_s13  ;;  %s26_s16 = int_to_ptr.hbm [resolvable:$true] %s25_s16 }
   0x4   :  { %20 = dma.hbm_to_vmem [thread:$0]  %s16_s11, 64, %s18_s13, [#allocation3]  }
   0x5   :  { %s1810_s17 = smov [#allocation5]   ;;  %s1811_s19 = smov 192  }
   0x6   :  { %s27_s18 = sshll.u32 %s1810_s17, 4  ;;  %s1812_s20 = smov 12   ;;  %s28_s18 = int_to_ptr.vmem [resolvable:$true] %s27_s18 }
   0x7   :  { %33 = dma.hbm_to_vmem [thread:$0]  %s26_s16, 15936, %s28_s18, [#allocation6], %s1811_s19, %s1811_s19, %s1812_s20  }
   0x8   :  { %1803 = dma.done.wait [#allocation3], 64  }
   0x9   :  { %1804 = vsyncadd [#allocation3], 4294967232 }
   0xa   :  { %1805 = dma.done.wait [#allocation6], 15936  }
   0xb   :  { %1806 = vsyncadd [#allocation6], 4294951360  ;;  %v1224_v0 = vld [vmem:[#allocation5 + $0x174] sm:$0xf]  ;;  %v1597_v1 = vld [vmem:[#allocation5 + $0x17c] sm:$0xf0] }
   0xc   :  { %v1596_v2 = vld [vmem:[#allocation5 + $0x178] sm:$0xf]  ;;  %v1225_v3 = vor.u32 %v1597_v1, %v1224_v0  ;;  %v1226_v4 = vld [vmem:[#allocation5 + $0x180] sm:$0xf0]  ;;  %v1216_v5 = vld [vmem:[#allocation5 + $0x15c] sm:$0xf] }
   0xd   :  { %v1595_v6 = vld [vmem:[#allocation5 + $0x164] sm:$0xf0]  ;;  %v1229_v7 = vor.u32 %v1596_v2, %v1226_v4  ;;  %v1594_v8 = vld [vmem:[#allocation5 + $0x160] sm:$0xf]  ;;  %v1218_v9 = vld [vmem:[#allocation5 + $0x168] sm:$0xf0] }
   0xe   :  { %144 = vmatpush.bf16.msra.mxu0 %v1225_v3  ;;  %v1217_v10 = vor.u32 %v1595_v6, %v1216_v5  ;;  %v1221_v11 = vor.u32 %v1594_v8, %v1218_v9  ;;  %v1208_v12 = vld [vmem:[#allocation5 + $0x144] sm:$0xf]  ;;  %v1593_v13 = vld [vmem:[#allocation5 + $0x14c] sm:$0xf0]  ;;  %v1592_v14 = vld [vmem:[#allocation5 + $0x148] sm:$0xf] }
   0xf   :  { %157 = vmatpush.bf16.msra.mxu1 %v1229_v7  ;;  %v1210_v15 = vld [vmem:[#allocation5 + $0x150] sm:$0xf0]  ;;  %v1209_v16 = vor.u32 %v1593_v13, %v1208_v12  ;;  %v1200_v18 = vld [vmem:[#allocation5 + $0x12c] sm:$0xf]  ;;  %v1591_v19 = vld [vmem:[#allocation5 + $0x134] sm:$0xf0] }
  0x10   :  { %v1213_v17 = vor.u32 %v1592_v14, %v1210_v15  ;;  %v1590_v20 = vld [vmem:[#allocation5 + $0x130] sm:$0xf]  ;;  %v1202_v21 = vld [vmem:[#allocation5 + $0x138] sm:$0xf0]  ;;  %v1201_v22 = vor.u32 %v1591_v19, %v1200_v18  ;;  %v1260_v23 = vld [vmem:[#allocation5 + $0x240] sm:$0xf] }
  0x11   :  { %v1605_v24 = vld [vmem:[#allocation5 + $0x248] sm:$0xf0]  ;;  %v1292_v25 = vld [vmem:[#allocation5 + $0x300] sm:$0xf]  ;;  %v1205_v26 = vor.u32 %v1590_v20, %v1202_v21  ;;  %v1192_v27 = vld [vmem:[#allocation5 + $0x114] sm:$0xf] }
  0x12   :  { %145 = vmatpush.bf16.msra.mxu0 %v1217_v10  ;;  %v1589_v28 = vld [vmem:[#allocation5 + $0x11c] sm:$0xf0]  ;;  %v1261_v29 = vor.u32 %v1605_v24, %v1260_v23  ;;  %v1613_v30 = vld [vmem:[#allocation5 + $0x308] sm:$0xf0]  ;;  %v1588_v31 = vld [vmem:[#allocation5 + $0x118] sm:$0xf] }
  0x13   :  { %158 = vmatpush.bf16.msra.mxu1 %v1221_v11  ;;  %v1194_v32 = vld [vmem:[#allocation5 + $0x120] sm:$0xf0]  ;;  %v1293_v33 = vor.u32 %v1613_v30, %v1292_v25  ;;  %v1193_v34 = vor.u32 %v1589_v28, %v1192_v27  ;;  %v1184_v36 = vld [vmem:[#allocation5 + $0xfc] sm:$0xf]  ;;  %v1587_v37 = vld [vmem:[#allocation5 + $0x104] sm:$0xf0] }
  0x14   :  { %329 = vmatpush.bf16.msra.mxu2 %v1261_v29  ;;  %v1197_v35 = vor.u32 %v1588_v31, %v1194_v32  ;;  %v1586_v38 = vld [vmem:[#allocation5 + $0x100] sm:$0xf]  ;;  %v1186_v39 = vld [vmem:[#allocation5 + $0x108] sm:$0xf0]  ;;  %v1185_v40 = vor.u32 %v1587_v37, %v1184_v36  ;;  %v1176_v42 = vld [vmem:[#allocation5 + $0xe4] sm:$0xf] }
  0x15   :  { %342 = vmatpush.bf16.msra.mxu3 %v1293_v33  ;;  %v1189_v41 = vor.u32 %v1586_v38, %v1186_v39  ;;  %v1585_v43 = vld [vmem:[#allocation5 + $0xec] sm:$0xf0]  ;;  %v1584_v44 = vld [vmem:[#allocation5 + $0xe8] sm:$0xf]  ;;  %v1178_v45 = vld [vmem:[#allocation5 + $0xf0] sm:$0xf0] }
  0x16   :  { %146 = vmatpush.bf16.msra.mxu0 %v1209_v16  ;;  %v1177_v46 = vor.u32 %v1585_v43, %v1176_v42  ;;  %v1181_v47 = vor.u32 %v1584_v44, %v1178_v45  ;;  %v1168_v48 = vld [vmem:[#allocation5 + $0xcc] sm:$0xf]  ;;  %v1583_v49 = vld [vmem:[#allocation5 + $0xd4] sm:$0xf0]  ;;  %v1582_v50 = vld [vmem:[#allocation5 + $0xd0] sm:$0xf] }
  0x17   :  { %159 = vmatpush.bf16.msra.mxu1 %v1213_v17  ;;  %v1170_v51 = vld [vmem:[#allocation5 + $0xd8] sm:$0xf0]  ;;  %v1169_v52 = vor.u32 %v1583_v49, %v1168_v48  ;;  %v1256_v55 = vld [vmem:[#allocation5 + $0x228] sm:$0xf]  ;;  %v1604_v56 = vld [vmem:[#allocation5 + $0x230] sm:$0xf0] }
  0x18   :  { %v1173_v53 = vor.u32 %v1582_v50, %v1170_v51  ;;  %v42_v54 = vld [vmem:[#allocation2] sm:$0xf]  ;;  %v1288_v57 = vld [vmem:[#allocation5 + $0x2e8] sm:$0xf]  ;;  %v1257_v58 = vor.u32 %v1604_v56, %v1256_v55  ;;  %v1612_v59 = vld [vmem:[#allocation5 + $0x2f0] sm:$0xf0] }
  0x19   :  { %v1289_v60 = vor.u32 %v1612_v59, %v1288_v57  ;;  %v1252_v61 = vld [vmem:[#allocation5 + $0x210] sm:$0xf]  ;;  %v1603_v62 = vld [vmem:[#allocation5 + $0x218] sm:$0xf0]  ;;  %v1248_v3 = vld [vmem:[#allocation5 + $0x1f8] sm:$0xf] }
  0x1a   :  { %147 = vmatpush.bf16.msra.mxu0 %v1201_v22  ;;  %330 = vmatpush.bf16.msra.mxu2 %v1257_v58  ;;  %v1284_v63 = vld [vmem:[#allocation5 + $0x2d0] sm:$0xf]  ;;  %v1253_v0 = vor.u32 %v1603_v62, %v1252_v61  ;;  %v1611_v1 = vld [vmem:[#allocation5 + $0x2d8] sm:$0xf0]  ;;  %v1602_v4 = vld [vmem:[#allocation5 + $0x200] sm:$0xf0] }
  0x1b   :  { %160 = vmatpush.bf16.msra.mxu1 %v1205_v26  ;;  %343 = vmatpush.bf16.msra.mxu3 %v1289_v60  ;;  %v1285_v2 = vor.u32 %v1611_v1, %v1284_v63  ;;  %v1280_v5 = vld [vmem:[#allocation5 + $0x2b8] sm:$0xf]  ;;  %v1249_v6 = vor.u32 %v1602_v4, %v1248_v3  ;;  %v1610_v7 = vld [vmem:[#allocation5 + $0x2c0] sm:$0xf0]  ;;  %v1244_v9 = vld [vmem:[#allocation5 + $0x1e0] sm:$0xf] }
  0x1c   :  { %v1281_v8 = vor.u32 %v1610_v7, %v1280_v5  ;;  %v1601_v10 = vld [vmem:[#allocation5 + $0x1e8] sm:$0xf0]  ;;  %v1276_v11 = vld [vmem:[#allocation5 + $0x2a0] sm:$0xf]  ;;  %v1240_v14 = vld [vmem:[#allocation5 + $0x1c8] sm:$0xf] }
  0x1d   :  { %v1245_v12 = vor.u32 %v1601_v10, %v1244_v9  ;;  %v1609_v13 = vld [vmem:[#allocation5 + $0x2a8] sm:$0xf0]  ;;  %v1600_v15 = vld [vmem:[#allocation5 + $0x1d0] sm:$0xf0]  ;;  %v1272_v17 = vld [vmem:[#allocation5 + $0x288] sm:$0xf] }
  0x1e   :  { %148 = vmatpush.bf16.msra.mxu0 %v1193_v34  ;;  %331 = vmatpush.bf16.msra.mxu2 %v1253_v0  ;;  %v1277_v16 = vor.u32 %v1609_v13, %v1276_v11  ;;  %v1608_v18 = vld [vmem:[#allocation5 + $0x290] sm:$0xf0]  ;;  %v1241_v19 = vor.u32 %v1600_v15, %v1240_v14  ;;  %v1236_v21 = vld [vmem:[#allocation5 + $0x1b0] sm:$0xf]  ;;  %v1599_v22 = vld [vmem:[#allocation5 + $0x1b8] sm:$0xf0] }
  0x1f   :  { %161 = vmatpush.bf16.msra.mxu1 %v1197_v35  ;;  %344 = vmatpush.bf16.msra.mxu3 %v1285_v2  ;;  %v1273_v20 = vor.u32 %v1608_v18, %v1272_v17  ;;  %v1268_v23 = vld [vmem:[#allocation5 + $0x270] sm:$0xf]  ;;  %v1607_v24 = vld [vmem:[#allocation5 + $0x278] sm:$0xf0]  ;;  %v1237_v25 = vor.u32 %v1599_v22, %v1236_v21  ;;  %v1232_v27 = vld [vmem:[#allocation5 + $0x198] sm:$0xf] }
  0x20   :  { %v1269_v26 = vor.u32 %v1607_v24, %v1268_v23  ;;  %v1598_v28 = vld [vmem:[#allocation5 + $0x1a0] sm:$0xf0]  ;;  %v1264_v29 = vld [vmem:[#allocation5 + $0x258] sm:$0xf]  ;;  %v59_v31 = vld [vmem:[#allocation5 + $0x18c] sm:$0x11] }
  0x21   :  { %v1606_v30 = vld [vmem:[#allocation5 + $0x260] sm:$0xf0]  ;;  %v1233_v32 = vor.u32 %v1598_v28, %v1232_v27  ;;  %v60_v34 = vunpack.c.l.bf16 %v59_v31  ;;  %v61_v35 = vunpack.c.h.bf16 %v59_v31  ;;  %v1380_v37 = vld [vmem:[#allocation5 + $0xa8] sm:$0xf]  ;;  %v1636_v38 = vld [vmem:[#allocation5 + $0xb0] sm:$0xf0] }
  0x22   :  { %149 = vmatpush.bf16.msra.mxu0 %v1185_v40  ;;  %332 = vmatpush.bf16.msra.mxu2 %v1249_v6  ;;  %v1265_v33 = vor.u32 %v1606_v30, %v1264_v29  ;;  %v1635_v39 = vld [vmem:[#allocation5 + $0xac] sm:$0xf]  ;;  %v1381_v40 = vor.u32 %v1636_v38, %v1380_v37  ;;  %v1388_v42 = vld [vmem:[#allocation5 + $0xb0] sm:$0xf]  ;;  %v1637_v43 = vld [vmem:[#allocation5 + $0xb8] sm:$0xf0] }
  0x23   :  { %162 = vmatpush.bf16.msra.mxu1 %v1189_v41  ;;  %345 = vmatpush.bf16.msra.mxu3 %v1281_v8  ;;  %v62_v36 = vperm.slane %v60_v34, 0  ;;  %v1382_v41 = vld [vmem:[#allocation5 + $0xb4] sm:$0xf0]  ;;  %v63_v44 = vperm.slane %v61_v35, 0  ;;  %v1368_v13 = vld [vmem:[#allocation5 + $0x90] sm:$0xf] }
  0x24   :  { %v1385_v45 = vor.u32 %v1635_v39, %v1382_v41  ;;  %v1633_v14 = vld [vmem:[#allocation5 + $0x98] sm:$0xf0]  ;;  %v1632_v15 = vld [vmem:[#allocation5 + $0x94] sm:$0xf]  ;;  %v1370_v17 = vld [vmem:[#allocation5 + $0x9c] sm:$0xf0] }
  0x25   :  { %v1376_v18 = vld [vmem:[#allocation5 + $0x98] sm:$0xf]  ;;  %v1630_v23 = vld [vmem:[#allocation5 + $0x80] sm:$0xf0]  ;;  %v1629_v24 = vld [vmem:[#allocation5 + $0x7c] sm:$0xf] }
  0x26   :  { %150 = vmatpush.bf16.msra.mxu0 %v1177_v46  ;;  %333 = vmatpush.bf16.msra.mxu2 %v1245_v12  ;;  %v1389_v46 = vor.u32 %v1637_v43, %v1388_v42  ;;  %v1356_v22 = vld [vmem:[#allocation5 + $0x78] sm:$0xf]  ;;  %v1364_v27 = vld [vmem:[#allocation5 + $0x80] sm:$0xf]  ;;  %v1631_v28 = vld [vmem:[#allocation5 + $0x88] sm:$0xf0] }
  0x27   :  { %163 = vmatpush.bf16.msra.mxu1 %v1181_v47  ;;  %346 = vmatpush.bf16.msra.mxu3 %v1277_v16  ;;  %v1369_v16 = vor.u32 %v1633_v14, %v1368_v13  ;;  %v1365_v30 = vor.u32 %v1631_v28, %v1364_v27  ;;  %v1344_v31 = vld [vmem:[#allocation5 + $0x60] sm:$0xf]  ;;  %v1346_v35 = vld [vmem:[#allocation5 + $0x6c] sm:$0xf0]  ;;  %v1628_v37 = vld [vmem:[#allocation5 + $0x70] sm:$0xf0] }
  0x28   :  { %v1624_v41 = vld [vmem:[#allocation5 + $0x50] sm:$0xf0]  ;;  %v1623_v42 = vld [vmem:[#allocation5 + $0x4c] sm:$0xf]  ;;  %s1813_s0 = smov [#allocation7]   ;;  %s1155_s23 = sshll.u32 %s1840_s2, 4  ;;  %s1156_s23 = int_to_ptr.hbm [resolvable:$true] %s1155_s23 }
  0x29   :  { %s1153_s1 = sshll.u32 %s1813_s0, 4  ;;  %s1154_s1 = int_to_ptr.vmem [resolvable:$true] %s1153_s1 }
  0x2a   :  { %151 = vmatpush.bf16.msra.mxu0 %v1169_v52  ;;  %334 = vmatpush.bf16.msra.mxu2 %v1241_v19  ;;  %v1634_v19 = vld [vmem:[#allocation5 + $0xa0] sm:$0xf0] }
  0x2b   :  { %164 = vmatpush.bf16.msra.mxu1 %v1173_v53  ;;  %347 = vmatpush.bf16.msra.mxu3 %v1273_v20  ;;  %v1373_v20 = vor.u32 %v1632_v15, %v1370_v17  ;;  %v1377_v21 = vor.u32 %v1634_v19, %v1376_v18  ;;  %v1420_v15 = vld [vmem:[#allocation5 + $0x17c] sm:$0xf]  ;;  %v1653_v19 = vld [vmem:[#allocation5 + $0x244] sm:$0xf0] }
  0x2c   :  { %v1452_v17 = vld [vmem:[#allocation5 + $0x23c] sm:$0xf] }
  0x2d   :  { %152 = vmatmul.bf16.vlgmr.msra.gmra.mxu0 %v42_v54 }
  0x2e   :  { %165 = vmatmul.bf16.vlgmr.msra.gmra.mxu1 %v42_v54  ;;  %335 = vmatpush.bf16.msra.mxu2 %v1237_v25  ;;  %v1357_v25 = vor.u32 %v1630_v23, %v1356_v22 }
  0x2f   :  { %348 = vmatpush.bf16.msra.mxu3 %v1269_v26  ;;  %537 = vmatpush.bf16.msrb.mxu0 %v1381_v40  ;;  %v1358_v26 = vld [vmem:[#allocation5 + $0x84] sm:$0xf0] }
  0x30   :  { %550 = vmatpush.bf16.msrb.mxu1 %v1385_v45  ;;  %v1361_v29 = vor.u32 %v1629_v24, %v1358_v26  ;;  %v1332_v40 = vld [vmem:[#allocation5 + $0x48] sm:$0xf]  ;;  %v1340_v45 = vld [vmem:[#allocation5 + $0x50] sm:$0xf] }
  0x31   :  { %v1333_v43 = vor.u32 %v1624_v41, %v1332_v40  ;;  %v1644_v40 = vld [vmem:[#allocation5 + $0x16c] sm:$0xf0]  ;;  %v1448_v41 = vld [vmem:[#allocation5 + $0x224] sm:$0xf] }
  0x32   :  { %336 = vmatpush.bf16.msra.mxu2 %v1233_v32  ;;  %v1627_v32 = vld [vmem:[#allocation5 + $0x68] sm:$0xf0] }
  0x33   :  { %349 = vmatpush.bf16.msra.mxu3 %v1265_v33  ;;  %538 = vmatpush.bf16.msrb.mxu0 %v1369_v16  ;;  %v1626_v33 = vld [vmem:[#allocation5 + $0x64] sm:$0xf]  ;;  %v1345_v34 = vor.u32 %v1627_v32, %v1344_v31  ;;  %v1645_v16 = vld [vmem:[#allocation5 + $0x184] sm:$0xf0] }
  0x34   :  { %551 = vmatpush.bf16.msrb.mxu1 %v1373_v20  ;;  %v1349_v38 = vor.u32 %v1626_v33, %v1346_v35  ;;  %v1421_v18 = vor.u32 %v1645_v16, %v1420_v15  ;;  %v1648_v15 = vld [vmem:[#allocation5 + $0x1cc] sm:$0xf0] }
  0x36   :  { %563 = vmatpush.bf16.msrb.mxu2 %v1389_v46  ;;  %v1625_v46 = vld [vmem:[#allocation5 + $0x58] sm:$0xf0] }
  0x37   :  { %539 = vmatpush.bf16.msrb.mxu0 %v1357_v25  ;;  %813 = vmatpush.bf16.msrb.mxu3 %v1421_v18  ;;  %v1657_v18 = vld [vmem:[#allocation5 + $0x2a4] sm:$0xf0] }
  0x38   :  { %552 = vmatpush.bf16.msrb.mxu1 %v1361_v29 }
  0x3a   :  { %564 = vmatpush.bf16.msrb.mxu2 %v1377_v21  ;;  %v1453_v21 = vor.u32 %v1653_v19, %v1452_v17  ;;  %v1468_v17 = vld [vmem:[#allocation5 + $0x29c] sm:$0xf] }
  0x3b   :  { %540 = vmatpush.bf16.msrb.mxu0 %v1345_v34  ;;  %v1469_v19 = vor.u32 %v1657_v18, %v1468_v17 }
  0x3c   :  { %553 = vmatpush.bf16.msrb.mxu1 %v1349_v38 }
  0x3e   :  { %565 = vmatpush.bf16.msrb.mxu2 %v1365_v30 }
  0x3f   :  { %541 = vmatpush.bf16.msrb.mxu0 %v1333_v43  ;;  %v1652_v43 = vld [vmem:[#allocation5 + $0x22c] sm:$0xf0] }
  0xaa   :  { %v153_v47 = vpop.f32.mrf.mxu0 }
  0xab   :  { %v154_v48 = vadd.f32 %v153_v47, %v62_v36  ;;  %v166_v49 = vpop.f32.mrf.mxu1  ;;  %v1352_v36 = vld [vmem:[#allocation5 + $0x68] sm:$0xf] }
  0xac   :  { %v167_v50 = vadd.f32 %v166_v49, %v63_v44  ;;  %v1353_v39 = vor.u32 %v1628_v37, %v1352_v36  ;;  %v1334_v44 = vld [vmem:[#allocation5 + $0x54] sm:$0xf0]  ;;  %v1320_v49 = vld [vmem:[#allocation5 + $0x30] sm:$0xf] }
  0xad   :  { %v172_v51 = vmul.f32 1.442695, %v154_v48  ;;  %vm170_vm1 = vcmp.gt.f32.partialorder %v154_v48, 20.0  ;;  %v1337_v47 = vor.u32 %v1623_v42, %v1334_v44  ;;  %v1449_v44 = vor.u32 %v1652_v43, %v1448_v41  ;;  %v1456_v41 = vld [vmem:[#allocation5 + $0x254] sm:$0xf] }
  0xae   :  { %v174_v52 = vmul.f32 1.442695, %v167_v50  ;;  %vm171_vm3 = vcmp.gt.f32.partialorder %v167_v50, 20.0  ;;  %566 = vmatpush.bf16.msrb.mxu2 %v1353_v39  ;;  %v1416_v39 = vld [vmem:[#allocation5 + $0x164] sm:$0xf] }
  0xaf   :  { %1691 = vpow2.f32 %v172_v51  ;;  %v1620_v51 = vld [vmem:[#allocation5 + $0x34] sm:$0xf]  ;;  %554 = vmatpush.bf16.msrb.mxu1 %v1337_v47  ;;  %v1417_v42 = vor.u32 %v1644_v40, %v1416_v39 }
  0xb0   :  { %1693 = vpow2.f32 %v174_v52  ;;  %v1322_v52 = vld [vmem:[#allocation5 + $0x3c] sm:$0xf0] }
  0xb1   :  { %814 = vmatpush.bf16.msrb.mxu3 %v1417_v42  ;;  %v1654_v42 = vld [vmem:[#allocation5 + $0x25c] sm:$0xf0] }
  0xb2   :  { %v155_v53 = vpop.f32.mrf.mxu0 }
  0xb3   :  { %v168_v54 = vpop.f32.mrf.mxu1  ;;  %v1328_v53 = vld [vmem:[#allocation5 + $0x38] sm:$0xf] }
  0xb4   :  { %v1622_v54 = vld [vmem:[#allocation5 + $0x40] sm:$0xf0] }
  0xb5   :  { %v1692_v55 = vpop.eup %1691 }
  0xb6   :  { %v1694_v56 = vpop.eup %1693  ;;  %v176_v57 = vadd.f32 1.0, %v1692_v55  ;;  %v179_v58 = vmul.f32 -0.5, %v1692_v55  ;;  %v182_v62 = vand.u32 2147483647, %v1692_v55 }
  0xb7   :  { %v185_v59 = vadd.f32 1.0, %v1694_v56  ;;  %v188_v60 = vmul.f32 -0.5, %v1694_v56  ;;  %v191_v0 = vand.u32 2147483647, %v1694_v56 }
  0xb8   :  { %1695 = vlog2.f32 %v176_v57  ;;  %v180_v61 = vadd.f32 1.0, %v179_v58  ;;  %vm183_vm0 = vcmp.lt.f32.partialorder %v182_v62, 0.0004427343  ;;  %v1329_v57 = vor.u32 %v1622_v54, %v1328_v53  ;;  %v1308_v58 = vld [vmem:[#allocation5 + $0x18] sm:$0xf] }
  0xb9   :  { %1697 = vlog2.f32 %v185_v59  ;;  %v189_v63 = vadd.f32 1.0, %v188_v60  ;;  %vm192_vm2 = vcmp.lt.f32.partialorder %v191_v0, 0.0004427343  ;;  %v1618_v59 = vld [vmem:[#allocation5 + $0x20] sm:$0xf0] }
  0xba   :  { %v181_v4 = vmul.f32 %v1692_v55, %v180_v61  ;;  %v1617_v60 = vld [vmem:[#allocation5 + $0x1c] sm:$0xf]  ;;  %v1310_v61 = vld [vmem:[#allocation5 + $0x24] sm:$0xf0]  ;;  %v1316_v62 = vld [vmem:[#allocation5 + $0x20] sm:$0xf]  ;;  %v1309_v0 = vor.u32 %v1618_v59, %v1308_v58 }
  0xbb   :  { %v190_v6 = vmul.f32 %v1694_v56, %v189_v63  ;;  %v1325_v56 = vor.u32 %v1620_v51, %v1322_v52  ;;  %v1619_v63 = vld [vmem:[#allocation5 + $0x28] sm:$0xf0]  ;;  %v1651_v52 = vld [vmem:[#allocation5 + $0x214] sm:$0xf0]  ;;  %v1480_v54 = vld [vmem:[#allocation5 + $0x2e4] sm:$0xf] }
  0xbc   :  { %v1642_v58 = vld [vmem:[#allocation5 + $0x13c] sm:$0xf0] }
  0xbd   :  { %555 = vmatpush.bf16.msrb.mxu1 %v1325_v56 }
  0xbe   :  { %v1696_v1 = vpop.eup %1695 }
  0xbf   :  { %v1698_v2 = vpop.eup %1697  ;;  %v178_v3 = vmul.f32 0.6931472, %v1696_v1  ;;  %v1313_v1 = vor.u32 %v1617_v60, %v1310_v61  ;;  %v1440_v60 = vld [vmem:[#allocation5 + $0x1f4] sm:$0xf]  ;;  %v1650_v61 = vld [vmem:[#allocation5 + $0x1fc] sm:$0xf0] }
  0xc0   :  { %v187_v5 = vmul.f32 0.6931472, %v1698_v2  ;;  %v1317_v2 = vor.u32 %v1619_v63, %v1316_v62  ;;  %v1441_v62 = vor.u32 %v1650_v61, %v1440_v60  ;;  %v1476_v63 = vld [vmem:[#allocation5 + $0x2cc] sm:$0xf] }
  0xc1   :  { %v184_v7 = vsel %vm183_vm0, %v181_v4, %v178_v3  ;;  %v1296_v3 = vld [vmem:[#allocation5] sm:$0xf]  ;;  %v1615_v4 = vld [vmem:[#allocation5 + $0x8] sm:$0xf0]  ;;  %556 = vmatpush.bf16.msrb.mxu1 %v1313_v1 }
  0xc2   :  { %v194_v8 = vsel %vm170_vm1, %v154_v48, %v184_v7  ;;  %v193_v9 = vsel %vm192_vm2, %v190_v6, %v187_v5  ;;  %v1341_v48 = vor.u32 %v1625_v46, %v1340_v45  ;;  %v1614_v5 = vld [vmem:[#allocation5 + $0x4] sm:$0xf]  ;;  %v1298_v6 = vld [vmem:[#allocation5 + $0xc] sm:$0xf0]  ;;  %v1304_v7 = vld [vmem:[#allocation5 + $0x8] sm:$0xf] }
  0xc3   :  { %v196_v10 = vpack.c.bf16 %v194_v8, %v194_v8  ;;  %v195_v11 = vsel %vm171_vm3, %v167_v50, %v193_v9  ;;  %v1621_v50 = vld [vmem:[#allocation5 + $0x38] sm:$0xf0]  ;;  %v1616_v8 = vld [vmem:[#allocation5 + $0x10] sm:$0xf0]  ;;  %v230_v9 = vld [vmem:[#allocation5 + $0x318] sm:$0x1] }
  0xc4   :  { %v197_v12 = vpack.c.bf16 %v195_v11, %v195_v11  ;;  %v1321_v55 = vor.u32 %v1621_v50, %v1320_v49  ;;  %567 = vmatpush.bf16.msrb.mxu2 %v1341_v48  ;;  %v1301_v11 = vor.u32 %v1614_v5, %v1298_v6  ;;  %v231_v13 = vunpack.c.l.bf16 %v230_v9  ;;  %v1484_v45 = vld [vmem:[#allocation5 + $0x2fc] sm:$0xf]  ;;  %v1661_v46 = vld [vmem:[#allocation5 + $0x304] sm:$0xf0]  ;;  %v1412_v48 = vld [vmem:[#allocation5 + $0x14c] sm:$0xf] }
  0xc5   :  { %337 = vmatmul.bf16.vlgmr.msra.gmra.mxu2 %v196_v10  ;;  %v1297_v10 = vor.u32 %v1615_v4, %v1296_v3  ;;  %v1485_v47 = vor.u32 %v1661_v46, %v1484_v45  ;;  %v1643_v49 = vld [vmem:[#allocation5 + $0x154] sm:$0xf0]  ;;  %v1444_v50 = vld [vmem:[#allocation5 + $0x20c] sm:$0xf]  ;;  %v1641_v3 = vld [vmem:[#allocation5 + $0x124] sm:$0xf0]  ;;  %v1457_v46 = vor.u32 %v1654_v42, %v1456_v41 }
  0xc6   :  { %350 = vmatmul.bf16.vlgmr.msra.gmra.mxu3 %v197_v12  ;;  %542 = vmatpush.bf16.msrb.mxu0 %v1321_v55  ;;  %v1305_v12 = vor.u32 %v1616_v8, %v1304_v7  ;;  %v232_v14 = vperm.slane %v231_v13, 0  ;;  %v1413_v51 = vor.u32 %v1643_v49, %v1412_v48  ;;  %v1445_v53 = vor.u32 %v1651_v52, %v1444_v50  ;;  %v1660_v55 = vld [vmem:[#allocation5 + $0x2ec] sm:$0xf0]  ;;  %v1436_v4 = vld [vmem:[#allocation5 + $0x1dc] sm:$0xf] }
  0xc7   :  { %557 = vmatpush.bf16.msrb.mxu1 %v1301_v11  ;;  %v1481_v56 = vor.u32 %v1660_v55, %v1480_v54  ;;  %v1649_v6 = vld [vmem:[#allocation5 + $0x1e4] sm:$0xf0]  ;;  %v1472_v8 = vld [vmem:[#allocation5 + $0x2b4] sm:$0xf]  ;;  %v1658_v9 = vld [vmem:[#allocation5 + $0x2bc] sm:$0xf0] }
  0xc8   :  { %568 = vmatpush.bf16.msrb.mxu2 %v1329_v57  ;;  %815 = vmatpush.bf16.msrb.mxu3 %v1413_v51  ;;  %v1408_v57 = vld [vmem:[#allocation5 + $0x134] sm:$0xf]  ;;  %v1437_v7 = vor.u32 %v1649_v6, %v1436_v4  ;;  %v1400_v11 = vld [vmem:[#allocation5 + $0x104] sm:$0xf]  ;;  %v402_v45 = vld [vmem:[#allocation5 + $0xc8] sm:$0x1] }
  0xc9   :  { %v1409_v59 = vor.u32 %v1642_v58, %v1408_v57  ;;  %v1432_v13 = vld [vmem:[#allocation5 + $0x1c4] sm:$0xf]  ;;  %v405_v49 = vunpack.c.l.bf16 %v402_v45  ;;  %v1496_v45 = vld [vmem:[#allocation5 + $0x1cc] sm:$0xf] }
  0xca   :  { %543 = vmatpush.bf16.msrb.mxu0 %v1309_v0  ;;  %v1659_v0 = vld [vmem:[#allocation5 + $0x2d4] sm:$0xf0]  ;;  %v1433_v16 = vor.u32 %v1648_v15, %v1432_v13  ;;  %v1500_v42 = vld [vmem:[#allocation5 + $0x1e4] sm:$0xf] }
  0xcb   :  { %839 = vmatpush.bf16.msra.mxu1 %v1485_v47  ;;  %v1477_v1 = vor.u32 %v1659_v0, %v1476_v63  ;;  %v408_v54 = vperm.slane %v405_v49, 0  ;;  %v1492_v49 = vld [vmem:[#allocation5 + $0x1b4] sm:$0xf] }
  0xcc   :  { %569 = vmatpush.bf16.msrb.mxu2 %v1317_v2  ;;  %816 = vmatpush.bf16.msrb.mxu3 %v1409_v59  ;;  %v1404_v2 = vld [vmem:[#allocation5 + $0x11c] sm:$0xf] }
  0xcd   :  { %v1405_v5 = vor.u32 %v1641_v3, %v1404_v2 }
  0xce   :  { %544 = vmatpush.bf16.msrb.mxu0 %v1297_v10  ;;  %v1473_v10 = vor.u32 %v1658_v9, %v1472_v8 }
  0xcf   :  { %840 = vmatpush.bf16.msra.mxu1 %v1481_v56 }
  0xd0   :  { %570 = vmatpush.bf16.msrb.mxu2 %v1305_v12  ;;  %817 = vmatpush.bf16.msrb.mxu3 %v1405_v5  ;;  %v1640_v12 = vld [vmem:[#allocation5 + $0x10c] sm:$0xf0] }
  0xd2   :  { %826 = vmatpush.bf16.msra.mxu0 %v1453_v21  ;;  %v1639_v21 = vld [vmem:[#allocation5 + $0xf4] sm:$0xf0] }
  0xd3   :  { %841 = vmatpush.bf16.msra.mxu1 %v1477_v1 }
  0xd6   :  { %827 = vmatpush.bf16.msra.mxu0 %v1449_v44 }
  0xd7   :  { %842 = vmatpush.bf16.msra.mxu1 %v1473_v10 }
  0xda   :  { %828 = vmatpush.bf16.msra.mxu0 %v1445_v53 }
  0xdb   :  { %843 = vmatpush.bf16.msra.mxu1 %v1469_v19 }
  0xde   :  { %829 = vmatpush.bf16.msra.mxu0 %v1441_v62 }
  0xe2   :  { %830 = vmatpush.bf16.msra.mxu0 %v1437_v7 }
  0xe6   :  { %831 = vmatpush.bf16.msra.mxu0 %v1433_v16 }
 0x148   :  { %v338_v20 = vpop.f32.mrf.mxu2 }
 0x149   :  { %v339_v22 = vadd.f32 %v338_v20, %v232_v14  ;;  %v351_v23 = vpop.f32.mrf.mxu3  ;;  %v1401_v14 = vor.u32 %v1640_v12, %v1400_v11  ;;  %v1396_v20 = vld [vmem:[#allocation5 + $0xec] sm:$0xf] }
 0x14b   :  { %v352_v24 = vadd.f32 %v351_v23, %v339_v22  ;;  %818 = vmatpush.bf16.msrb.mxu3 %v1401_v14  ;;  %v1428_v22 = vld [vmem:[#allocation5 + $0x1ac] sm:$0xf]  ;;  %v1397_v23 = vor.u32 %v1639_v21, %v1396_v20 }
 0x14d   :  { %v356_v25 = vmul.f32 1.442695, %v352_v24  ;;  %vm355_vm5 = vcmp.gt.f32.partialorder %v352_v24, 20.0 }
 0x14f   :  { %1699 = vpow2.f32 %v356_v25  ;;  %819 = vmatpush.bf16.msrb.mxu3 %v1397_v23 }
 0x150   :  { %v340_v26 = vpop.f32.mrf.mxu2 }
 0x151   :  { %v353_v27 = vpop.f32.mrf.mxu3  ;;  %v1464_v26 = vld [vmem:[#allocation5 + $0x284] sm:$0xf] }
 0x152   :  { %v1656_v27 = vld [vmem:[#allocation5 + $0x28c] sm:$0xf0] }
 0x155   :  { %v1700_v28 = vpop.eup %1699 }
 0x156   :  { %v358_v29 = vadd.f32 1.0, %v1700_v28  ;;  %v361_v30 = vmul.f32 -0.5, %v1700_v28  ;;  %v364_v32 = vand.u32 2147483647, %v1700_v28 }
 0x158   :  { %1701 = vlog2.f32 %v358_v29  ;;  %v362_v31 = vadd.f32 1.0, %v361_v30  ;;  %vm365_vm4 = vcmp.lt.f32.partialorder %v364_v32, 0.0004427343  ;;  %v1465_v29 = vor.u32 %v1656_v27, %v1464_v26  ;;  %v1392_v30 = vld [vmem:[#allocation5 + $0xd4] sm:$0xf] }
 0x159   :  { %v1424_v32 = vld [vmem:[#allocation5 + $0x194] sm:$0xf] }
 0x15a   :  { %v363_v35 = vmul.f32 %v1700_v28, %v362_v31  ;;  %v401_v28 = vld [vmem:[#allocation5 + $0xc0] sm:$0x11]  ;;  %844 = vmatpush.bf16.msra.mxu1 %v1465_v29 }
 0x15b   :  { %v1638_v31 = vld [vmem:[#allocation5 + $0xdc] sm:$0xf0]  ;;  %v404_v39 = vunpack.c.h.bf16 %v401_v28 }
 0x15d   :  { %v407_v44 = vperm.slane %v404_v39, 0  ;;  %v1504_v39 = vld [vmem:[#allocation5 + $0x1fc] sm:$0xf] }
 0x15e   :  { %v1702_v33 = vpop.eup %1701 }
 0x15f   :  { %v360_v34 = vmul.f32 0.6931472, %v1702_v33  ;;  %v1393_v33 = vor.u32 %v1638_v31, %v1392_v30  ;;  %v1516_v30 = vld [vmem:[#allocation5 + $0x244] sm:$0xf]  ;;  %v1669_v31 = vld [vmem:[#allocation5 + $0x24c] sm:$0xf0] }
 0x161   :  { %v366_v36 = vsel %vm365_vm4, %v363_v35, %v360_v34  ;;  %v1646_v34 = vld [vmem:[#allocation5 + $0x19c] sm:$0xf0]  ;;  %820 = vmatpush.bf16.msrb.mxu3 %v1393_v33  ;;  %v1512_v33 = vld [vmem:[#allocation5 + $0x22c] sm:$0xf] }
 0x162   :  { %v367_v37 = vsel %vm355_vm5, %v352_v24, %v366_v36  ;;  %v1647_v24 = vld [vmem:[#allocation5 + $0x1b4] sm:$0xf0]  ;;  %v1425_v35 = vor.u32 %v1646_v34, %v1424_v32  ;;  %v1460_v36 = vld [vmem:[#allocation5 + $0x26c] sm:$0xf]  ;;  %v1517_v32 = vor.u32 %v1669_v31, %v1516_v30  ;;  %v1672_v30 = vld [vmem:[#allocation5 + $0x2a0] sm:$0xf0] }
 0x163   :  { %v368_v38 = vpack.c.bf16 %v367_v37, %v367_v37  ;;  %v1429_v25 = vor.u32 %v1647_v24, %v1428_v22  ;;  %v1655_v37 = vld [vmem:[#allocation5 + $0x274] sm:$0xf0] }
 0x164   :  { %v1461_v40 = vor.u32 %v1655_v37, %v1460_v36  ;;  %933 = vmatpush.bf16.msra.mxu2 %v1517_v32  ;;  %v1668_v34 = vld [vmem:[#allocation5 + $0x234] sm:$0xf0]  ;;  %v1508_v36 = vld [vmem:[#allocation5 + $0x214] sm:$0xf]  ;;  %v1667_v37 = vld [vmem:[#allocation5 + $0x21c] sm:$0xf0] }
 0x165   :  { %545 = vmatmul.bf16.vlgmr.msrb.gmra.mxu0 %v368_v38  ;;  %558 = vmatmul.bf16.vlgmr.msrb.gmra.mxu1 %v368_v38  ;;  %v1524_v32 = vld [vmem:[#allocation5 + $0x280] sm:$0xf] }
 0x166   :  { %571 = vmatmul.bf16.vlgmr.msrb.gmra.mxu2 %v368_v38  ;;  %832 = vmatpush.bf16.msra.mxu0 %v1429_v25  ;;  %v403_v38 = vunpack.c.l.bf16 %v401_v28 }
 0x167   :  { %845 = vmatpush.bf16.msra.mxu1 %v1461_v40  ;;  %v1666_v40 = vld [vmem:[#allocation5 + $0x204] sm:$0xf0] }
 0x168   :  { %v406_v43 = vperm.slane %v403_v38, 0  ;;  %v1509_v38 = vor.u32 %v1667_v37, %v1508_v36  ;;  %v1505_v41 = vor.u32 %v1666_v40, %v1504_v39  ;;  %v1520_v36 = vld [vmem:[#allocation5 + $0x268] sm:$0xf]  ;;  %v1670_v37 = vld [vmem:[#allocation5 + $0x270] sm:$0xf0] }
 0x169   :  { %v1580_v40 = vld [vmem:[#allocation5 + $0x3c8] sm:$0xf] }
 0x16a   :  { %833 = vmatpush.bf16.msra.mxu0 %v1425_v35  ;;  %v1513_v35 = vor.u32 %v1668_v34, %v1512_v33  ;;  %v1671_v33 = vld [vmem:[#allocation5 + $0x288] sm:$0xf0] }
 0x16b   :  { %846 = vmatpush.bf16.msra.mxu1 %v1457_v46  ;;  %v1664_v46 = vld [vmem:[#allocation5 + $0x1d4] sm:$0xf0]  ;;  %v1525_v34 = vor.u32 %v1671_v33, %v1524_v32 }
 0x16c   :  { %934 = vmatpush.bf16.msra.mxu2 %v1513_v35  ;;  %v882_v35 = vld [vmem:[#allocation5 + $0x25c] sm:$0x1] }
 0x16d   :  { %v883_v39 = vunpack.c.l.bf16 %v882_v35 }
 0x170   :  { %935 = vmatpush.bf16.msra.mxu2 %v1509_v38  ;;  %v1521_v38 = vor.u32 %v1670_v37, %v1520_v36 }
 0x174   :  { %936 = vmatpush.bf16.msra.mxu2 %v1505_v41  ;;  %v1685_v41 = vld [vmem:[#allocation5 + $0x3d0] sm:$0xf0] }
 0x1e2   :  { %v546_v47 = vpop.f32.mrf.mxu0  ;;  %v559_v48 = vpop.f32.mrf.mxu1 }
 0x1e3   :  { %v547_v50 = vadd.f32 %v546_v47, %v406_v43  ;;  %v560_v51 = vadd.f32 %v559_v48, %v407_v44  ;;  %v1665_v43 = vld [vmem:[#allocation5 + $0x1ec] sm:$0xf0]  ;;  %v1497_v47 = vor.u32 %v1664_v46, %v1496_v45  ;;  %v666_v48 = vld [vmem:[#allocation5 + $0x314] sm:$0x1] }
 0x1e4   :  { %v1501_v44 = vor.u32 %v1665_v43, %v1500_v42  ;;  %v1581_v42 = vor.u32 %v1685_v41, %v1580_v40  ;;  %v884_v43 = vperm.slane %v883_v39, 0 }
 0x1e5   :  { %v579_v52 = vmul.f32 1.442695, %v547_v50  ;;  %v581_v53 = vmul.f32 1.442695, %v560_v51  ;;  %vm576_vm7 = vcmp.gt.f32.partialorder %v547_v50, 20.0  ;;  %vm577_vm9 = vcmp.gt.f32.partialorder %v560_v51, 20.0 }
 0x1e6   :  { %937 = vmatpush.bf16.msra.mxu2 %v1501_v44  ;;  %1121 = vmatpush.bf16.msrb.mxu0 %v1581_v42 }
 0x1e7   :  { %1703 = vpow2.f32 %v579_v52  ;;  %v667_v52 = vunpack.c.l.bf16 %v666_v48 }
 0x1e8   :  { %1705 = vpow2.f32 %v581_v53  ;;  %v1488_v53 = vld [vmem:[#allocation5 + $0x19c] sm:$0xf] }
 0x1e9   :  { %v572_v55 = vpop.f32.mrf.mxu2 }
 0x1ea   :  { %v573_v56 = vadd.f32 %v572_v55, %v408_v54  ;;  %v548_v57 = vpop.f32.mrf.mxu0  ;;  %v561_v58 = vpop.f32.mrf.mxu1  ;;  %938 = vmatpush.bf16.msra.mxu2 %v1497_v47  ;;  %v1662_v54 = vld [vmem:[#allocation5 + $0x1a4] sm:$0xf0] }
 0x1eb   :  { %v668_v57 = vperm.slane %v667_v52, 0  ;;  %v1548_v58 = vld [vmem:[#allocation5 + $0x310] sm:$0xf] }
 0x1ec   :  { %v583_v59 = vmul.f32 1.442695, %v573_v56  ;;  %vm578_vm11 = vcmp.gt.f32.partialorder %v573_v56, 20.0 }
 0x1ed   :  { %v1704_v60 = vpop.eup %1703 }
 0x1ee   :  { %v1706_v61 = vpop.eup %1705  ;;  %1707 = vpow2.f32 %v583_v59  ;;  %v585_v62 = vadd.f32 1.0, %v1704_v60  ;;  %v588_v0 = vmul.f32 -0.5, %v1704_v60  ;;  %v591_v6 = vand.u32 2147483647, %v1704_v60  ;;  %v1677_v59 = vld [vmem:[#allocation5 + $0x318] sm:$0xf0] }
 0x1ef   :  { %v594_v63 = vadd.f32 1.0, %v1706_v61  ;;  %v597_v1 = vmul.f32 -0.5, %v1706_v61  ;;  %v600_v7 = vand.u32 2147483647, %v1706_v61 }
 0x1f0   :  { %1709 = vlog2.f32 %v585_v62  ;;  %v589_v3 = vadd.f32 1.0, %v588_v0  ;;  %vm592_vm6 = vcmp.lt.f32.partialorder %v591_v6, 0.0004427343 }
 0x1f1   :  { %1711 = vlog2.f32 %v594_v63  ;;  %v574_v2 = vpop.f32.mrf.mxu2  ;;  %v598_v5 = vadd.f32 1.0, %v597_v1  ;;  %vm601_vm8 = vcmp.lt.f32.partialorder %v600_v7, 0.0004427343 }
 0x1f2   :  { %v590_v13 = vmul.f32 %v1704_v60, %v589_v3 }
 0x1f3   :  { %v599_v15 = vmul.f32 %v1706_v61, %v598_v5  ;;  %v1549_v61 = vor.u32 %v1677_v59, %v1548_v58  ;;  %v1576_v59 = vld [vmem:[#allocation5 + $0x3b0] sm:$0xf] }
 0x1f4   :  { %v1708_v4 = vpop.eup %1707 }
 0x1f5   :  { %v603_v8 = vadd.f32 1.0, %v1708_v4  ;;  %v606_v10 = vmul.f32 -0.5, %v1708_v4  ;;  %v609_v21 = vand.u32 2147483647, %v1708_v4  ;;  %1027 = vmatpush.bf16.msra.mxu3 %v1549_v61 }
 0x1f6   :  { %v1710_v9 = vpop.eup %1709 }
 0x1f7   :  { %v1712_v11 = vpop.eup %1711  ;;  %1713 = vlog2.f32 %v603_v8  ;;  %v587_v12 = vmul.f32 0.6931472, %v1710_v9  ;;  %v607_v18 = vadd.f32 1.0, %v606_v10  ;;  %vm610_vm10 = vcmp.lt.f32.partialorder %v609_v21, 0.0004427343 }
 0x1f8   :  { %v596_v14 = vmul.f32 0.6931472, %v1712_v11  ;;  %v1675_v21 = vld [vmem:[#allocation5 + $0x2e8] sm:$0xf0] }
 0x1f9   :  { %v593_v16 = vsel %vm592_vm6, %v590_v13, %v587_v12  ;;  %v608_v26 = vmul.f32 %v1708_v4, %v607_v18  ;;  %v1676_v18 = vld [vmem:[#allocation5 + $0x300] sm:$0xf0] }
 0x1fa   :  { %v602_v17 = vsel %vm601_vm8, %v599_v15, %v596_v14  ;;  %v612_v19 = vsel %vm576_vm7, %v547_v50, %v593_v16  ;;  %v1663_v50 = vld [vmem:[#allocation5 + $0x1bc] sm:$0xf0] }
 0x1fb   :  { %v613_v20 = vsel %vm577_vm9, %v560_v51, %v602_v17  ;;  %v615_v22 = vpack.c.bf16 %v612_v19, %v612_v19  ;;  %v1493_v51 = vor.u32 %v1663_v50, %v1492_v49  ;;  %v1544_v17 = vld [vmem:[#allocation5 + $0x2f8] sm:$0xf] }
 0x1fc   :  { %v616_v23 = vpack.c.bf16 %v613_v20, %v613_v20  ;;  %v1545_v19 = vor.u32 %v1676_v18, %v1544_v17  ;;  %v1540_v20 = vld [vmem:[#allocation5 + $0x2e0] sm:$0xf] }
 0x1fd   :  { %v1714_v24 = vpop.eup %1713  ;;  %821 = vmatmul.bf16.vlgmr.msrb.gmra.mxu3 %v615_v22  ;;  %939 = vmatpush.bf16.msra.mxu2 %v1493_v51  ;;  %v1541_v22 = vor.u32 %v1675_v21, %v1540_v20 }
 0x1fe   :  { %v605_v25 = vmul.f32 0.6931472, %v1714_v24  ;;  %834 = vmatmul.bf16.vlgmr.msra.gmra.mxu0 %v616_v23  ;;  %1028 = vmatpush.bf16.msra.mxu3 %v1545_v19  ;;  %v1536_v23 = vld [vmem:[#allocation5 + $0x2c8] sm:$0xf]  ;;  %v1674_v24 = vld [vmem:[#allocation5 + $0x2d0] sm:$0xf0] }
 0x200   :  { %v611_v27 = vsel %vm610_vm10, %v608_v26, %v605_v25  ;;  %v1537_v25 = vor.u32 %v1674_v24, %v1536_v23  ;;  %v1532_v26 = vld [vmem:[#allocation5 + $0x2b0] sm:$0xf] }
 0x201   :  { %v614_v28 = vsel %vm578_vm11, %v573_v56, %v611_v27  ;;  %v1489_v56 = vor.u32 %v1662_v54, %v1488_v53  ;;  %v1673_v27 = vld [vmem:[#allocation5 + $0x2b8] sm:$0xf0] }
 0x202   :  { %v617_v29 = vpack.c.bf16 %v614_v28, %v614_v28  ;;  %1029 = vmatpush.bf16.msra.mxu3 %v1541_v22  ;;  %v1533_v28 = vor.u32 %v1673_v27, %v1532_v26 }
 0x203   :  { %940 = vmatpush.bf16.msra.mxu2 %v1489_v56 }
 0x204   :  { %847 = vmatmul.bf16.vlgmr.msra.gmra.mxu1 %v617_v29  ;;  %v1528_v29 = vld [vmem:[#allocation5 + $0x298] sm:$0xf] }
 0x205   :  { %v1529_v31 = vor.u32 %v1672_v30, %v1528_v29 }
 0x206   :  { %1030 = vmatpush.bf16.msra.mxu3 %v1537_v25 }
 0x20a   :  { %1031 = vmatpush.bf16.msra.mxu3 %v1533_v28 }
 0x20e   :  { %1032 = vmatpush.bf16.msra.mxu3 %v1529_v31 }
 0x212   :  { %1033 = vmatpush.bf16.msra.mxu3 %v1525_v34  ;;  %v1070_v34 = vld [vmem:[#allocation5 + $0x3e0] sm:$0x1] }
 0x213   :  { %v1071_v35 = vunpack.c.l.bf16 %v1070_v34 }
 0x215   :  { %v1072_v36 = vperm.slane %v1071_v35, 0 }
 0x216   :  { %1034 = vmatpush.bf16.msra.mxu3 %v1521_v38 }
 0x27b   :  { %v835_v55 = vpop.f32.mrf.mxu0 }
 0x280   :  { %v822_v60 = vpop.f32.mrf.mxu3 }
 0x281   :  { %v823_v62 = vadd.f32 %v822_v60, %v668_v57  ;;  %v848_v63 = vpop.f32.mrf.mxu1  ;;  %v1684_v60 = vld [vmem:[#allocation5 + $0x3b8] sm:$0xf0] }
 0x282   :  { %v1577_v61 = vor.u32 %v1684_v60, %v1576_v59 }
 0x283   :  { %v836_v0 = vadd.f32 %v835_v55, %v823_v62  ;;  %v837_v1 = vpop.f32.mrf.mxu0  ;;  %v1572_v62 = vld [vmem:[#allocation5 + $0x398] sm:$0xf] }
 0x284   :  { %1122 = vmatpush.bf16.msrb.mxu0 %v1577_v61  ;;  %v1568_v1 = vld [vmem:[#allocation5 + $0x380] sm:$0xf] }
 0x285   :  { %v849_v2 = vadd.f32 %v848_v63, %v836_v0  ;;  %v1683_v63 = vld [vmem:[#allocation5 + $0x3a0] sm:$0xf0] }
 0x286   :  { %v1573_v0 = vor.u32 %v1683_v63, %v1572_v62 }
 0x287   :  { %v853_v3 = vmul.f32 1.442695, %v849_v2  ;;  %vm852_vm13 = vcmp.gt.f32.partialorder %v849_v2, 20.0 }
 0x288   :  { %v824_v4 = vpop.f32.mrf.mxu3  ;;  %1123 = vmatpush.bf16.msrb.mxu0 %v1573_v0 }
 0x289   :  { %1715 = vpow2.f32 %v853_v3  ;;  %v850_v5 = vpop.f32.mrf.mxu1  ;;  %v1564_v4 = vld [vmem:[#allocation5 + $0x368] sm:$0xf] }
 0x28a   :  { %v1681_v5 = vld [vmem:[#allocation5 + $0x370] sm:$0xf0] }
 0x28f   :  { %v1716_v6 = vpop.eup %1715 }
 0x290   :  { %v855_v7 = vadd.f32 1.0, %v1716_v6  ;;  %v858_v8 = vmul.f32 -0.5, %v1716_v6  ;;  %v861_v10 = vand.u32 2147483647, %v1716_v6 }
 0x292   :  { %1717 = vlog2.f32 %v855_v7  ;;  %v859_v9 = vadd.f32 1.0, %v858_v8  ;;  %vm862_vm12 = vcmp.lt.f32.partialorder %v861_v10, 0.0004427343  ;;  %v1560_v7 = vld [vmem:[#allocation5 + $0x350] sm:$0xf] }
 0x293   :  { %v1680_v8 = vld [vmem:[#allocation5 + $0x358] sm:$0xf0]  ;;  %v1556_v10 = vld [vmem:[#allocation5 + $0x338] sm:$0xf] }
 0x294   :  { %v860_v13 = vmul.f32 %v1716_v6, %v859_v9  ;;  %v1565_v6 = vor.u32 %v1681_v5, %v1564_v4  ;;  %v1561_v9 = vor.u32 %v1680_v8, %v1560_v7 }
 0x298   :  { %v1718_v11 = vpop.eup %1717 }
 0x299   :  { %v857_v12 = vmul.f32 0.6931472, %v1718_v11  ;;  %v1679_v11 = vld [vmem:[#allocation5 + $0x340] sm:$0xf0] }
 0x29b   :  { %v863_v14 = vsel %vm862_vm12, %v860_v13, %v857_v12  ;;  %v1557_v12 = vor.u32 %v1679_v11, %v1556_v10  ;;  %v976_v13 = vld [vmem:[#allocation5 + $0x328] sm:$0x1] }
 0x29c   :  { %v864_v15 = vsel %vm852_vm13, %v849_v2, %v863_v14  ;;  %v1682_v2 = vld [vmem:[#allocation5 + $0x388] sm:$0xf0]  ;;  %v1552_v14 = vld [vmem:[#allocation5 + $0x320] sm:$0xf]  ;;  %v977_v17 = vunpack.c.l.bf16 %v976_v13 }
 0x29d   :  { %v865_v16 = vpack.c.bf16 %v864_v15, %v864_v15  ;;  %v1569_v3 = vor.u32 %v1682_v2, %v1568_v1  ;;  %v1678_v15 = vld [vmem:[#allocation5 + $0x328] sm:$0xf0] }
 0x29e   :  { %v978_v18 = vperm.slane %v977_v17, 0 }
 0x29f   :  { %941 = vmatmul.bf16.vlgmr.msra.gmra.mxu2 %v865_v16  ;;  %1124 = vmatpush.bf16.msrb.mxu0 %v1569_v3  ;;  %v1553_v16 = vor.u32 %v1678_v15, %v1552_v14 }
 0x2a3   :  { %1125 = vmatpush.bf16.msrb.mxu0 %v1565_v6 }
 0x2a7   :  { %1126 = vmatpush.bf16.msrb.mxu0 %v1561_v9 }
 0x2ab   :  { %1127 = vmatpush.bf16.msrb.mxu0 %v1557_v12 }
 0x2af   :  { %1128 = vmatpush.bf16.msrb.mxu0 %v1553_v16 }
 0x322   :  { %v942_v44 = vpop.f32.mrf.mxu2 }
 0x323   :  { %v943_v45 = vadd.f32 %v942_v44, %v884_v43 }
 0x325   :  { %v947_v46 = vmul.f32 1.442695, %v943_v45  ;;  %vm946_vm15 = vcmp.gt.f32.partialorder %v943_v45, 20.0 }
 0x327   :  { %1719 = vpow2.f32 %v947_v46 }
 0x32a   :  { %v944_v47 = vpop.f32.mrf.mxu2 }
 0x32d   :  { %v1720_v48 = vpop.eup %1719 }
 0x32e   :  { %v949_v49 = vadd.f32 1.0, %v1720_v48  ;;  %v952_v50 = vmul.f32 -0.5, %v1720_v48  ;;  %v955_v52 = vand.u32 2147483647, %v1720_v48 }
 0x330   :  { %1721 = vlog2.f32 %v949_v49  ;;  %v953_v51 = vadd.f32 1.0, %v952_v50  ;;  %vm956_vm14 = vcmp.lt.f32.partialorder %v955_v52, 0.0004427343 }
 0x332   :  { %v954_v55 = vmul.f32 %v1720_v48, %v953_v51 }
 0x336   :  { %v1722_v53 = vpop.eup %1721 }
 0x337   :  { %v951_v54 = vmul.f32 0.6931472, %v1722_v53 }
 0x339   :  { %v957_v56 = vsel %vm956_vm14, %v954_v55, %v951_v54 }
 0x33a   :  { %v958_v57 = vsel %vm946_vm15, %v943_v45, %v957_v56 }
 0x33b   :  { %v959_v58 = vpack.c.bf16 %v958_v57, %v958_v57 }
 0x33d   :  { %1035 = vmatmul.bf16.vlgmr.msra.gmra.mxu3 %v959_v58 }
 0x3c0   :  { %v1036_v19 = vpop.f32.mrf.mxu3 }
 0x3c1   :  { %v1037_v20 = vadd.f32 %v1036_v19, %v978_v18 }
 0x3c3   :  { %v1041_v21 = vmul.f32 1.442695, %v1037_v20  ;;  %vm1040_vm1 = vcmp.gt.f32.partialorder %v1037_v20, 20.0 }
 0x3c5   :  { %1723 = vpow2.f32 %v1041_v21 }
 0x3c8   :  { %v1038_v22 = vpop.f32.mrf.mxu3 }
 0x3cb   :  { %v1724_v23 = vpop.eup %1723 }
 0x3cc   :  { %v1043_v24 = vadd.f32 1.0, %v1724_v23  ;;  %v1046_v25 = vmul.f32 -0.5, %v1724_v23  ;;  %v1049_v27 = vand.u32 2147483647, %v1724_v23 }
 0x3ce   :  { %1725 = vlog2.f32 %v1043_v24  ;;  %v1047_v26 = vadd.f32 1.0, %v1046_v25  ;;  %vm1050_vm0 = vcmp.lt.f32.partialorder %v1049_v27, 0.0004427343 }
 0x3d0   :  { %v1048_v30 = vmul.f32 %v1724_v23, %v1047_v26 }
 0x3d4   :  { %v1726_v28 = vpop.eup %1725 }
 0x3d5   :  { %v1045_v29 = vmul.f32 0.6931472, %v1726_v28 }
 0x3d7   :  { %v1051_v31 = vsel %vm1050_vm0, %v1048_v30, %v1045_v29 }
 0x3d8   :  { %v1052_v32 = vsel %vm1040_vm1, %v1037_v20, %v1051_v31 }
 0x3d9   :  { %v1053_v33 = vpack.c.bf16 %v1052_v32, %v1052_v32 }
 0x3db   :  { %1129 = vmatmul.bf16.vlgmr.msrb.gmra.mxu0 %v1053_v33 }
 0x458   :  { %v1130_v37 = vpop.f32.mrf.mxu0 }
 0x459   :  { %v1131_v38 = vadd.f32 %v1130_v37, %v1072_v36 }
 0x45b   :  { %v1135_v39 = vmul.f32 1.442695, %v1131_v38  ;;  %vm1134_vm3 = vcmp.gt.f32.partialorder %v1131_v38, 20.0 }
 0x45d   :  { %1727 = vpow2.f32 %v1135_v39 }
 0x460   :  { %v1132_v40 = vpop.f32.mrf.mxu0 }
 0x463   :  { %v1728_v41 = vpop.eup %1727 }
 0x464   :  { %v1137_v42 = vadd.f32 1.0, %v1728_v41  ;;  %v1140_v43 = vmul.f32 -0.5, %v1728_v41  ;;  %v1143_v45 = vand.u32 2147483647, %v1728_v41 }
 0x466   :  { %1729 = vlog2.f32 %v1137_v42  ;;  %v1141_v44 = vadd.f32 1.0, %v1140_v43  ;;  %vm1144_vm2 = vcmp.lt.f32.partialorder %v1143_v45, 0.0004427343 }
 0x468   :  { %v1142_v48 = vmul.f32 %v1728_v41, %v1141_v44 }
 0x46c   :  { %v1730_v46 = vpop.eup %1729 }
 0x46d   :  { %v1139_v47 = vmul.f32 0.6931472, %v1730_v46 }
 0x46f   :  { %v1145_v49 = vsel %vm1144_vm2, %v1142_v48, %v1139_v47 }
 0x470   :  { %v1146_v50 = vsel %vm1134_vm3, %v1131_v38, %v1145_v49 }
 0x471   :  { %1147 = vst [vmem:[#allocation7] sm:$0xff] %v1146_v50 }
 0x472   :  { %1158 = dma.vmem_to_hbm [thread:$0]  %s1154_s1, 128, %s1156_s23, [#allocation4]  }
 0x473   :  { %1807 = dma.done.wait [#allocation4], 128  }
 0x474   :  { %1808 = vsyncadd [#allocation4], 4294967168 }
 0x475   :  { %1163 = vsyncpa [#allocation3], 1 }
 0x476   :  { %1164 = vsyncpa [#allocation6], 1 }
 0x477   :  { %1165 = vsyncpa [#allocation4], 1 }

// kernel: tpu_custom_call.1
= control target key start
LH: loop header
LB: loop body
LE: loop exit
PB: predicated region body
PF: predicated region fallthrough
CT: control target
= control target key end

     0   :  { %7 = vsyncpa [#allocation3], 0  ;;  %s1838_s0 = inlined_call_operand.hbm [shape: bf16[8,128], index: 0, kind: input, shape index: {}]   ;;  %s1839_s1 = inlined_call_operand.hbm [shape: bf16[664,384], index: 1, kind: input, shape index: {}]   ;;  %s1840_s2 = inlined_call_operand.hbm [shape: f32[8,128], index: 2, kind: output, shape index: {}]  }
   0x1   :  { %8 = vsyncpa [#allocation6], 0 }
   0x2   :  { %9 = vsyncpa [#allocation4], 0  ;;  %s15_s11 = sshll.u32 %s1838_s0, 4  ;;  %s1809_s12 = smov [#allocation2]   ;;  %s16_s11 = int_to_ptr.hbm [resolvable:$true] %s15_s11 }
   0x3   :  { %s17_s13 = sshll.u32 %s1809_s12, 4  ;;  %s25_s16 = sshll.u32 %s1839_s1, 4  ;;  %s18_s13 = int_to_ptr.vmem [resolvable:$true] %s17_s13  ;;  %s26_s16 = int_to_ptr.hbm [resolvable:$true] %s25_s16 }
   0x4   :  { %20 = dma.hbm_to_vmem [thread:$0]  %s16_s11, 64, %s18_s13, [#allocation3]  }
   0x5   :  { %s1810_s17 = smov [#allocation5]   ;;  %s1811_s19 = smov 192  }
   0x6   :  { %s27_s18 = sshll.u32 %s1810_s17, 4  ;;  %s1812_s20 = smov 12   ;;  %s28_s18 = int_to_ptr.vmem [resolvable:$true] %s27_s18 }
   0x7   :  { %33 = dma.hbm_to_vmem [thread:$0]  %s26_s16, 15936, %s28_s18, [#allocation6], %s1811_s19, %s1811_s19, %s1812_s20  }
   0x8   :  { %1803 = dma.done.wait [#allocation3], 64  }
   0x9   :  { %1804 = vsyncadd [#allocation3], 4294967232 }
   0xa   :  { %1805 = dma.done.wait [#allocation6], 15936  }
   0xb   :  { %1806 = vsyncadd [#allocation6], 4294951360  ;;  %v1224_v0 = vld [vmem:[#allocation5 + $0x174] sm:$0xf]  ;;  %v1597_v1 = vld [vmem:[#allocation5 + $0x17c] sm:$0xf0] }
   0xc   :  { %v1596_v2 = vld [vmem:[#allocation5 + $0x178] sm:$0xf]  ;;  %v1225_v3 = vor.u32 %v1597_v1, %v1224_v0  ;;  %v1226_v4 = vld [vmem:[#allocation5 + $0x180] sm:$0xf0]  ;;  %v1216_v5 = vld [vmem:[#allocation5 + $0x15c] sm:$0xf] }
   0xd   :  { %v1595_v6 = vld [vmem:[#allocation5 + $0x164] sm:$0xf0]  ;;  %v1229_v7 = vor.u32 %v1596_v2, %v1226_v4  ;;  %v1594_v8 = vld [vmem:[#allocation5 + $0x160] sm:$0xf]  ;;  %v1218_v9 = vld [vmem:[#allocation5 + $0x168] sm:$0xf0] }
   0xe   :  { %144 = vmatpush.bf16.msra.mxu0 %v1225_v3  ;;  %v1217_v10 = vor.u32 %v1595_v6, %v1216_v5  ;;  %v1221_v11 = vor.u32 %v1594_v8, %v1218_v9  ;;  %v1208_v12 = vld [vmem:[#allocation5 + $0x144] sm:$0xf]  ;;  %v1593_v13 = vld [vmem:[#allocation5 + $0x14c] sm:$0xf0]  ;;  %v1592_v14 = vld [vmem:[#allocation5 + $0x148] sm:$0xf] }
   0xf   :  { %157 = vmatpush.bf16.msra.mxu1 %v1229_v7  ;;  %v1210_v15 = vld [vmem:[#allocation5 + $0x150] sm:$0xf0]  ;;  %v1209_v16 = vor.u32 %v1593_v13, %v1208_v12  ;;  %v1200_v18 = vld [vmem:[#allocation5 + $0x12c] sm:$0xf]  ;;  %v1591_v19 = vld [vmem:[#allocation5 + $0x134] sm:$0xf0] }
  0x10   :  { %v1213_v17 = vor.u32 %v1592_v14, %v1210_v15  ;;  %v1590_v20 = vld [vmem:[#allocation5 + $0x130] sm:$0xf]  ;;  %v1202_v21 = vld [vmem:[#allocation5 + $0x138] sm:$0xf0]  ;;  %v1201_v22 = vor.u32 %v1591_v19, %v1200_v18  ;;  %v1260_v23 = vld [vmem:[#allocation5 + $0x240] sm:$0xf] }
  0x11   :  { %v1605_v24 = vld [vmem:[#allocation5 + $0x248] sm:$0xf0]  ;;  %v1292_v25 = vld [vmem:[#allocation5 + $0x300] sm:$0xf]  ;;  %v1205_v26 = vor.u32 %v1590_v20, %v1202_v21  ;;  %v1192_v27 = vld [vmem:[#allocation5 + $0x114] sm:$0xf] }
  0x12   :  { %145 = vmatpush.bf16.msra.mxu0 %v1217_v10  ;;  %v1589_v28 = vld [vmem:[#allocation5 + $0x11c] sm:$0xf0]  ;;  %v1261_v29 = vor.u32 %v1605_v24, %v1260_v23  ;;  %v1613_v30 = vld [vmem:[#allocation5 + $0x308] sm:$0xf0]  ;;  %v1588_v31 = vld [vmem:[#allocation5 + $0x118] sm:$0xf] }
  0x13   :  { %158 = vmatpush.bf16.msra.mxu1 %v1221_v11  ;;  %v1194_v32 = vld [vmem:[#allocation5 + $0x120] sm:$0xf0]  ;;  %v1293_v33 = vor.u32 %v1613_v30, %v1292_v25  ;;  %v1193_v34 = vor.u32 %v1589_v28, %v1192_v27  ;;  %v1184_v36 = vld [vmem:[#allocation5 + $0xfc] sm:$0xf]  ;;  %v1587_v37 = vld [vmem:[#allocation5 + $0x104] sm:$0xf0] }
  0x14   :  { %329 = vmatpush.bf16.msra.mxu2 %v1261_v29  ;;  %v1197_v35 = vor.u32 %v1588_v31, %v1194_v32  ;;  %v1586_v38 = vld [vmem:[#allocation5 + $0x100] sm:$0xf]  ;;  %v1186_v39 = vld [vmem:[#allocation5 + $0x108] sm:$0xf0]  ;;  %v1185_v40 = vor.u32 %v1587_v37, %v1184_v36  ;;  %v1176_v42 = vld [vmem:[#allocation5 + $0xe4] sm:$0xf] }
  0x15   :  { %342 = vmatpush.bf16.msra.mxu3 %v1293_v33  ;;  %v1189_v41 = vor.u32 %v1586_v38, %v1186_v39  ;;  %v1585_v43 = vld [vmem:[#allocation5 + $0xec] sm:$0xf0]  ;;  %v1584_v44 = vld [vmem:[#allocation5 + $0xe8] sm:$0xf]  ;;  %v1178_v45 = vld [vmem:[#allocation5 + $0xf0] sm:$0xf0] }
  0x16   :  { %146 = vmatpush.bf16.msra.mxu0 %v1209_v16  ;;  %v1177_v46 = vor.u32 %v1585_v43, %v1176_v42  ;;  %v1181_v47 = vor.u32 %v1584_v44, %v1178_v45  ;;  %v1168_v48 = vld [vmem:[#allocation5 + $0xcc] sm:$0xf]  ;;  %v1583_v49 = vld [vmem:[#allocation5 + $0xd4] sm:$0xf0]  ;;  %v1582_v50 = vld [vmem:[#allocation5 + $0xd0] sm:$0xf] }
  0x17   :  { %159 = vmatpush.bf16.msra.mxu1 %v1213_v17  ;;  %v1170_v51 = vld [vmem:[#allocation5 + $0xd8] sm:$0xf0]  ;;  %v1169_v52 = vor.u32 %v1583_v49, %v1168_v48  ;;  %v1256_v55 = vld [vmem:[#allocation5 + $0x228] sm:$0xf]  ;;  %v1604_v56 = vld [vmem:[#allocation5 + $0x230] sm:$0xf0] }
  0x18   :  { %v1173_v53 = vor.u32 %v1582_v50, %v1170_v51  ;;  %v42_v54 = vld [vmem:[#allocation2] sm:$0xf]  ;;  %v1288_v57 = vld [vmem:[#allocation5 + $0x2e8] sm:$0xf]  ;;  %v1257_v58 = vor.u32 %v1604_v56, %v1256_v55  ;;  %v1612_v59 = vld [vmem:[#allocation5 + $0x2f0] sm:$0xf0] }
  0x19   :  { %v1289_v60 = vor.u32 %v1612_v59, %v1288_v57  ;;  %v1252_v61 = vld [vmem:[#allocation5 + $0x210] sm:$0xf]  ;;  %v1603_v62 = vld [vmem:[#allocation5 + $0x218] sm:$0xf0]  ;;  %v1248_v3 = vld [vmem:[#allocation5 + $0x1f8] sm:$0xf] }
  0x1a   :  { %147 = vmatpush.bf16.msra.mxu0 %v1201_v22  ;;  %330 = vmatpush.bf16.msra.mxu2 %v1257_v58  ;;  %v1284_v63 = vld [vmem:[#allocation5 + $0x2d0] sm:$0xf]  ;;  %v1253_v0 = vor.u32 %v1603_v62, %v1252_v61  ;;  %v1611_v1 = vld [vmem:[#allocation5 + $0x2d8] sm:$0xf0]  ;;  %v1602_v4 = vld [vmem:[#allocation5 + $0x200] sm:$0xf0] }
  0x1b   :  { %160 = vmatpush.bf16.msra.mxu1 %v1205_v26  ;;  %343 = vmatpush.bf16.msra.mxu3 %v1289_v60  ;;  %v1285_v2 = vor.u32 %v1611_v1, %v1284_v63  ;;  %v1280_v5 = vld [vmem:[#allocation5 + $0x2b8] sm:$0xf]  ;;  %v1249_v6 = vor.u32 %v1602_v4, %v1248_v3  ;;  %v1610_v7 = vld [vmem:[#allocation5 + $0x2c0] sm:$0xf0]  ;;  %v1244_v9 = vld [vmem:[#allocation5 + $0x1e0] sm:$0xf] }
  0x1c   :  { %v1281_v8 = vor.u32 %v1610_v7, %v1280_v5  ;;  %v1601_v10 = vld [vmem:[#allocation5 + $0x1e8] sm:$0xf0]  ;;  %v1276_v11 = vld [vmem:[#allocation5 + $0x2a0] sm:$0xf]  ;;  %v1240_v14 = vld [vmem:[#allocation5 + $0x1c8] sm:$0xf] }
  0x1d   :  { %v1245_v12 = vor.u32 %v1601_v10, %v1244_v9  ;;  %v1609_v13 = vld [vmem:[#allocation5 + $0x2a8] sm:$0xf0]  ;;  %v1600_v15 = vld [vmem:[#allocation5 + $0x1d0] sm:$0xf0]  ;;  %v1272_v17 = vld [vmem:[#allocation5 + $0x288] sm:$0xf] }
  0x1e   :  { %148 = vmatpush.bf16.msra.mxu0 %v1193_v34  ;;  %331 = vmatpush.bf16.msra.mxu2 %v1253_v0  ;;  %v1277_v16 = vor.u32 %v1609_v13, %v1276_v11  ;;  %v1608_v18 = vld [vmem:[#allocation5 + $0x290] sm:$0xf0]  ;;  %v1241_v19 = vor.u32 %v1600_v15, %v1240_v14  ;;  %v1236_v21 = vld [vmem:[#allocation5 + $0x1b0] sm:$0xf]  ;;  %v1599_v22 = vld [vmem:[#allocation5 + $0x1b8] sm:$0xf0] }
  0x1f   :  { %161 = vmatpush.bf16.msra.mxu1 %v1197_v35  ;;  %344 = vmatpush.bf16.msra.mxu3 %v1285_v2  ;;  %v1273_v20 = vor.u32 %v1608_v18, %v1272_v17  ;;  %v1268_v23 = vld [vmem:[#allocation5 + $0x270] sm:$0xf]  ;;  %v1607_v24 = vld [vmem:[#allocation5 + $0x278] sm:$0xf0]  ;;  %v1237_v25 = vor.u32 %v1599_v22, %v1236_v21  ;;  %v1232_v27 = vld [vmem:[#allocation5 + $0x198] sm:$0xf] }
  0x20   :  { %v1269_v26 = vor.u32 %v1607_v24, %v1268_v23  ;;  %v1598_v28 = vld [vmem:[#allocation5 + $0x1a0] sm:$0xf0]  ;;  %v1264_v29 = vld [vmem:[#allocation5 + $0x258] sm:$0xf]  ;;  %v59_v31 = vld [vmem:[#allocation5 + $0x18c] sm:$0x11] }
  0x21   :  { %v1606_v30 = vld [vmem:[#allocation5 + $0x260] sm:$0xf0]  ;;  %v1233_v32 = vor.u32 %v1598_v28, %v1232_v27  ;;  %v60_v34 = vunpack.c.l.bf16 %v59_v31  ;;  %v61_v35 = vunpack.c.h.bf16 %v59_v31  ;;  %v1380_v37 = vld [vmem:[#allocation5 + $0xa8] sm:$0xf]  ;;  %v1636_v38 = vld [vmem:[#allocation5 + $0xb0] sm:$0xf0] }
  0x22   :  { %149 = vmatpush.bf16.msra.mxu0 %v1185_v40  ;;  %332 = vmatpush.bf16.msra.mxu2 %v1249_v6  ;;  %v1265_v33 = vor.u32 %v1606_v30, %v1264_v29  ;;  %v1635_v39 = vld [vmem:[#allocation5 + $0xac] sm:$0xf]  ;;  %v1381_v40 = vor.u32 %v1636_v38, %v1380_v37  ;;  %v1388_v42 = vld [vmem:[#allocation5 + $0xb0] sm:$0xf]  ;;  %v1637_v43 = vld [vmem:[#allocation5 + $0xb8] sm:$0xf0] }
  0x23   :  { %162 = vmatpush.bf16.msra.mxu1 %v1189_v41  ;;  %345 = vmatpush.bf16.msra.mxu3 %v1281_v8  ;;  %v62_v36 = vperm.slane %v60_v34, 0  ;;  %v1382_v41 = vld [vmem:[#allocation5 + $0xb4] sm:$0xf0]  ;;  %v63_v44 = vperm.slane %v61_v35, 0  ;;  %v1368_v13 = vld [vmem:[#allocation5 + $0x90] sm:$0xf] }
  0x24   :  { %v1385_v45 = vor.u32 %v1635_v39, %v1382_v41  ;;  %v1633_v14 = vld [vmem:[#allocation5 + $0x98] sm:$0xf0]  ;;  %v1632_v15 = vld [vmem:[#allocation5 + $0x94] sm:$0xf]  ;;  %v1370_v17 = vld [vmem:[#allocation5 + $0x9c] sm:$0xf0] }
  0x25   :  { %v1376_v18 = vld [vmem:[#allocation5 + $0x98] sm:$0xf]  ;;  %v1630_v23 = vld [vmem:[#allocation5 + $0x80] sm:$0xf0]  ;;  %v1629_v24 = vld [vmem:[#allocation5 + $0x7c] sm:$0xf] }
  0x26   :  { %150 = vmatpush.bf16.msra.mxu0 %v1177_v46  ;;  %333 = vmatpush.bf16.msra.mxu2 %v1245_v12  ;;  %v1389_v46 = vor.u32 %v1637_v43, %v1388_v42  ;;  %v1356_v22 = vld [vmem:[#allocation5 + $0x78] sm:$0xf]  ;;  %v1364_v27 = vld [vmem:[#allocation5 + $0x80] sm:$0xf]  ;;  %v1631_v28 = vld [vmem:[#allocation5 + $0x88] sm:$0xf0] }
  0x27   :  { %163 = vmatpush.bf16.msra.mxu1 %v1181_v47  ;;  %346 = vmatpush.bf16.msra.mxu3 %v1277_v16  ;;  %v1369_v16 = vor.u32 %v1633_v14, %v1368_v13  ;;  %v1365_v30 = vor.u32 %v1631_v28, %v1364_v27  ;;  %v1344_v31 = vld [vmem:[#allocation5 + $0x60] sm:$0xf]  ;;  %v1346_v35 = vld [vmem:[#allocation5 + $0x6c] sm:$0xf0]  ;;  %v1628_v37 = vld [vmem:[#allocation5 + $0x70] sm:$0xf0] }
  0x28   :  { %v1624_v41 = vld [vmem:[#allocation5 + $0x50] sm:$0xf0]  ;;  %v1623_v42 = vld [vmem:[#allocation5 + $0x4c] sm:$0xf]  ;;  %s1813_s0 = smov [#allocation7]   ;;  %s1155_s23 = sshll.u32 %s1840_s2, 4  ;;  %s1156_s23 = int_to_ptr.hbm [resolvable:$true] %s1155_s23 }
  0x29   :  { %s1153_s1 = sshll.u32 %s1813_s0, 4  ;;  %s1154_s1 = int_to_ptr.vmem [resolvable:$true] %s1153_s1 }
  0x2a   :  { %151 = vmatpush.bf16.msra.mxu0 %v1169_v52  ;;  %334 = vmatpush.bf16.msra.mxu2 %v1241_v19  ;;  %v1634_v19 = vld [vmem:[#allocation5 + $0xa0] sm:$0xf0] }
  0x2b   :  { %164 = vmatpush.bf16.msra.mxu1 %v1173_v53  ;;  %347 = vmatpush.bf16.msra.mxu3 %v1273_v20  ;;  %v1373_v20 = vor.u32 %v1632_v15, %v1370_v17  ;;  %v1377_v21 = vor.u32 %v1634_v19, %v1376_v18  ;;  %v1420_v15 = vld [vmem:[#allocation5 + $0x17c] sm:$0xf]  ;;  %v1653_v19 = vld [vmem:[#allocation5 + $0x244] sm:$0xf0] }
  0x2c   :  { %v1452_v17 = vld [vmem:[#allocation5 + $0x23c] sm:$0xf] }
  0x2d   :  { %152 = vmatmul.bf16.vlgmr.msra.gmra.mxu0 %v42_v54 }
  0x2e   :  { %165 = vmatmul.bf16.vlgmr.msra.gmra.mxu1 %v42_v54  ;;  %335 = vmatpush.bf16.msra.mxu2 %v1237_v25  ;;  %v1357_v25 = vor.u32 %v1630_v23, %v1356_v22 }
  0x2f   :  { %348 = vmatpush.bf16.msra.mxu3 %v1269_v26  ;;  %537 = vmatpush.bf16.msrb.mxu0 %v1381_v40  ;;  %v1358_v26 = vld [vmem:[#allocation5 + $0x84] sm:$0xf0] }
  0x30   :  { %550 = vmatpush.bf16.msrb.mxu1 %v1385_v45  ;;  %v1361_v29 = vor.u32 %v1629_v24, %v1358_v26  ;;  %v1332_v40 = vld [vmem:[#allocation5 + $0x48] sm:$0xf]  ;;  %v1340_v45 = vld [vmem:[#allocation5 + $0x50] sm:$0xf] }
  0x31   :  { %v1333_v43 = vor.u32 %v1624_v41, %v1332_v40  ;;  %v1644_v40 = vld [vmem:[#allocation5 + $0x16c] sm:$0xf0]  ;;  %v1448_v41 = vld [vmem:[#allocation5 + $0x224] sm:$0xf] }
  0x32   :  { %336 = vmatpush.bf16.msra.mxu2 %v1233_v32  ;;  %v1627_v32 = vld [vmem:[#allocation5 + $0x68] sm:$0xf0] }
  0x33   :  { %349 = vmatpush.bf16.msra.mxu3 %v1265_v33  ;;  %538 = vmatpush.bf16.msrb.mxu0 %v1369_v16  ;;  %v1626_v33 = vld [vmem:[#allocation5 + $0x64] sm:$0xf]  ;;  %v1345_v34 = vor.u32 %v1627_v32, %v1344_v31  ;;  %v1645_v16 = vld [vmem:[#allocation5 + $0x184] sm:$0xf0] }
  0x34   :  { %551 = vmatpush.bf16.msrb.mxu1 %v1373_v20  ;;  %v1349_v38 = vor.u32 %v1626_v33, %v1346_v35  ;;  %v1421_v18 = vor.u32 %v1645_v16, %v1420_v15  ;;  %v1648_v15 = vld [vmem:[#allocation5 + $0x1cc] sm:$0xf0] }
  0x36   :  { %563 = vmatpush.bf16.msrb.mxu2 %v1389_v46  ;;  %v1625_v46 = vld [vmem:[#allocation5 + $0x58] sm:$0xf0] }
  0x37   :  { %539 = vmatpush.bf16.msrb.mxu0 %v1357_v25  ;;  %813 = vmatpush.bf16.msrb.mxu3 %v1421_v18  ;;  %v1657_v18 = vld [vmem:[#allocation5 + $0x2a4] sm:$0xf0] }
  0x38   :  { %552 = vmatpush.bf16.msrb.mxu1 %v1361_v29 }
  0x3a   :  { %564 = vmatpush.bf16.msrb.mxu2 %v1377_v21  ;;  %v1453_v21 = vor.u32 %v1653_v19, %v1452_v17  ;;  %v1468_v17 = vld [vmem:[#allocation5 + $0x29c] sm:$0xf] }
  0x3b   :  { %540 = vmatpush.bf16.msrb.mxu0 %v1345_v34  ;;  %v1469_v19 = vor.u32 %v1657_v18, %v1468_v17 }
  0x3c   :  { %553 = vmatpush.bf16.msrb.mxu1 %v1349_v38 }
  0x3e   :  { %565 = vmatpush.bf16.msrb.mxu2 %v1365_v30 }
  0x3f   :  { %541 = vmatpush.bf16.msrb.mxu0 %v1333_v43  ;;  %v1652_v43 = vld [vmem:[#allocation5 + $0x22c] sm:$0xf0] }
  0xaa   :  { %v153_v47 = vpop.f32.mrf.mxu0 }
  0xab   :  { %v154_v48 = vadd.f32 %v153_v47, %v62_v36  ;;  %v166_v49 = vpop.f32.mrf.mxu1  ;;  %v1352_v36 = vld [vmem:[#allocation5 + $0x68] sm:$0xf] }
  0xac   :  { %v167_v50 = vadd.f32 %v166_v49, %v63_v44  ;;  %v1353_v39 = vor.u32 %v1628_v37, %v1352_v36  ;;  %v1334_v44 = vld [vmem:[#allocation5 + $0x54] sm:$0xf0]  ;;  %v1320_v49 = vld [vmem:[#allocation5 + $0x30] sm:$0xf] }
  0xad   :  { %v172_v51 = vmul.f32 1.442695, %v154_v48  ;;  %vm170_vm1 = vcmp.gt.f32.partialorder %v154_v48, 20.0  ;;  %v1337_v47 = vor.u32 %v1623_v42, %v1334_v44  ;;  %v1449_v44 = vor.u32 %v1652_v43, %v1448_v41  ;;  %v1456_v41 = vld [vmem:[#allocation5 + $0x254] sm:$0xf] }
  0xae   :  { %v174_v52 = vmul.f32 1.442695, %v167_v50  ;;  %vm171_vm3 = vcmp.gt.f32.partialorder %v167_v50, 20.0  ;;  %566 = vmatpush.bf16.msrb.mxu2 %v1353_v39  ;;  %v1416_v39 = vld [vmem:[#allocation5 + $0x164] sm:$0xf] }
  0xaf   :  { %1691 = vpow2.f32 %v172_v51  ;;  %v1620_v51 = vld [vmem:[#allocation5 + $0x34] sm:$0xf]  ;;  %554 = vmatpush.bf16.msrb.mxu1 %v1337_v47  ;;  %v1417_v42 = vor.u32 %v1644_v40, %v1416_v39 }
  0xb0   :  { %1693 = vpow2.f32 %v174_v52  ;;  %v1322_v52 = vld [vmem:[#allocation5 + $0x3c] sm:$0xf0] }
  0xb1   :  { %814 = vmatpush.bf16.msrb.mxu3 %v1417_v42  ;;  %v1654_v42 = vld [vmem:[#allocation5 + $0x25c] sm:$0xf0] }
  0xb2   :  { %v155_v53 = vpop.f32.mrf.mxu0 }
  0xb3   :  { %v168_v54 = vpop.f32.mrf.mxu1  ;;  %v1328_v53 = vld [vmem:[#allocation5 + $0x38] sm:$0xf] }
  0xb4   :  { %v1622_v54 = vld [vmem:[#allocation5 + $0x40] sm:$0xf0] }
  0xb5   :  { %v1692_v55 = vpop.eup %1691 }
  0xb6   :  { %v1694_v56 = vpop.eup %1693  ;;  %v176_v57 = vadd.f32 1.0, %v1692_v55  ;;  %v179_v58 = vmul.f32 -0.5, %v1692_v55  ;;  %v182_v62 = vand.u32 2147483647, %v1692_v55 }
  0xb7   :  { %v185_v59 = vadd.f32 1.0, %v1694_v56  ;;  %v188_v60 = vmul.f32 -0.5, %v1694_v56  ;;  %v191_v0 = vand.u32 2147483647, %v1694_v56 }
  0xb8   :  { %1695 = vlog2.f32 %v176_v57  ;;  %v180_v61 = vadd.f32 1.0, %v179_v58  ;;  %vm183_vm0 = vcmp.lt.f32.partialorder %v182_v62, 0.0004427343  ;;  %v1329_v57 = vor.u32 %v1622_v54, %v1328_v53  ;;  %v1308_v58 = vld [vmem:[#allocation5 + $0x18] sm:$0xf] }
  0xb9   :  { %1697 = vlog2.f32 %v185_v59  ;;  %v189_v63 = vadd.f32 1.0, %v188_v60  ;;  %vm192_vm2 = vcmp.lt.f32.partialorder %v191_v0, 0.0004427343  ;;  %v1618_v59 = vld [vmem:[#allocation5 + $0x20] sm:$0xf0] }
  0xba   :  { %v181_v4 = vmul.f32 %v1692_v55, %v180_v61  ;;  %v1617_v60 = vld [vmem:[#allocation5 + $0x1c] sm:$0xf]  ;;  %v1310_v61 = vld [vmem:[#allocation5 + $0x24] sm:$0xf0]  ;;  %v1316_v62 = vld [vmem:[#allocation5 + $0x20] sm:$0xf]  ;;  %v1309_v0 = vor.u32 %v1618_v59, %v1308_v58 }
  0xbb   :  { %v190_v6 = vmul.f32 %v1694_v56, %v189_v63  ;;  %v1325_v56 = vor.u32 %v1620_v51, %v1322_v52  ;;  %v1619_v63 = vld [vmem:[#allocation5 + $0x28] sm:$0xf0]  ;;  %v1651_v52 = vld [vmem:[#allocation5 + $0x214] sm:$0xf0]  ;;  %v1480_v54 = vld [vmem:[#allocation5 + $0x2e4] sm:$0xf] }
  0xbc   :  { %v1642_v58 = vld [vmem:[#allocation5 + $0x13c] sm:$0xf0] }
  0xbd   :  { %555 = vmatpush.bf16.msrb.mxu1 %v1325_v56 }
  0xbe   :  { %v1696_v1 = vpop.eup %1695 }
  0xbf   :  { %v1698_v2 = vpop.eup %1697  ;;  %v178_v3 = vmul.f32 0.6931472, %v1696_v1  ;;  %v1313_v1 = vor.u32 %v1617_v60, %v1310_v61  ;;  %v1440_v60 = vld [vmem:[#allocation5 + $0x1f4] sm:$0xf]  ;;  %v1650_v61 = vld [vmem:[#allocation5 + $0x1fc] sm:$0xf0] }
  0xc0   :  { %v187_v5 = vmul.f32 0.6931472, %v1698_v2  ;;  %v1317_v2 = vor.u32 %v1619_v63, %v1316_v62  ;;  %v1441_v62 = vor.u32 %v1650_v61, %v1440_v60  ;;  %v1476_v63 = vld [vmem:[#allocation5 + $0x2cc] sm:$0xf] }
  0xc1   :  { %v184_v7 = vsel %vm183_vm0, %v181_v4, %v178_v3  ;;  %v1296_v3 = vld [vmem:[#allocation5] sm:$0xf]  ;;  %v1615_v4 = vld [vmem:[#allocation5 + $0x8] sm:$0xf0]  ;;  %556 = vmatpush.bf16.msrb.mxu1 %v1313_v1 }
  0xc2   :  { %v194_v8 = vsel %vm170_vm1, %v154_v48, %v184_v7  ;;  %v193_v9 = vsel %vm192_vm2, %v190_v6, %v187_v5  ;;  %v1341_v48 = vor.u32 %v1625_v46, %v1340_v45  ;;  %v1614_v5 = vld [vmem:[#allocation5 + $0x4] sm:$0xf]  ;;  %v1298_v6 = vld [vmem:[#allocation5 + $0xc] sm:$0xf0]  ;;  %v1304_v7 = vld [vmem:[#allocation5 + $0x8] sm:$0xf] }
  0xc3   :  { %v196_v10 = vpack.c.bf16 %v194_v8, %v194_v8  ;;  %v195_v11 = vsel %vm171_vm3, %v167_v50, %v193_v9  ;;  %v1621_v50 = vld [vmem:[#allocation5 + $0x38] sm:$0xf0]  ;;  %v1616_v8 = vld [vmem:[#allocation5 + $0x10] sm:$0xf0]  ;;  %v230_v9 = vld [vmem:[#allocation5 + $0x318] sm:$0x1] }
  0xc4   :  { %v197_v12 = vpack.c.bf16 %v195_v11, %v195_v11  ;;  %v1321_v55 = vor.u32 %v1621_v50, %v1320_v49  ;;  %567 = vmatpush.bf16.msrb.mxu2 %v1341_v48  ;;  %v1301_v11 = vor.u32 %v1614_v5, %v1298_v6  ;;  %v231_v13 = vunpack.c.l.bf16 %v230_v9  ;;  %v1484_v45 = vld [vmem:[#allocation5 + $0x2fc] sm:$0xf]  ;;  %v1661_v46 = vld [vmem:[#allocation5 + $0x304] sm:$0xf0]  ;;  %v1412_v48 = vld [vmem:[#allocation5 + $0x14c] sm:$0xf] }
  0xc5   :  { %337 = vmatmul.bf16.vlgmr.msra.gmra.mxu2 %v196_v10  ;;  %v1297_v10 = vor.u32 %v1615_v4, %v1296_v3  ;;  %v1485_v47 = vor.u32 %v1661_v46, %v1484_v45  ;;  %v1643_v49 = vld [vmem:[#allocation5 + $0x154] sm:$0xf0]  ;;  %v1444_v50 = vld [vmem:[#allocation5 + $0x20c] sm:$0xf]  ;;  %v1641_v3 = vld [vmem:[#allocation5 + $0x124] sm:$0xf0]  ;;  %v1457_v46 = vor.u32 %v1654_v42, %v1456_v41 }
  0xc6   :  { %350 = vmatmul.bf16.vlgmr.msra.gmra.mxu3 %v197_v12  ;;  %542 = vmatpush.bf16.msrb.mxu0 %v1321_v55  ;;  %v1305_v12 = vor.u32 %v1616_v8, %v1304_v7  ;;  %v232_v14 = vperm.slane %v231_v13, 0  ;;  %v1413_v51 = vor.u32 %v1643_v49, %v1412_v48  ;;  %v1445_v53 = vor.u32 %v1651_v52, %v1444_v50  ;;  %v1660_v55 = vld [vmem:[#allocation5 + $0x2ec] sm:$0xf0]  ;;  %v1436_v4 = vld [vmem:[#allocation5 + $0x1dc] sm:$0xf] }
  0xc7   :  { %557 = vmatpush.bf16.msrb.mxu1 %v1301_v11  ;;  %v1481_v56 = vor.u32 %v1660_v55, %v1480_v54  ;;  %v1649_v6 = vld [vmem:[#allocation5 + $0x1e4] sm:$0xf0]  ;;  %v1472_v8 = vld [vmem:[#allocation5 + $0x2b4] sm:$0xf]  ;;  %v1658_v9 = vld [vmem:[#allocation5 + $0x2bc] sm:$0xf0] }
  0xc8   :  { %568 = vmatpush.bf16.msrb.mxu2 %v1329_v57  ;;  %815 = vmatpush.bf16.msrb.mxu3 %v1413_v51  ;;  %v1408_v57 = vld [vmem:[#allocation5 + $0x134] sm:$0xf]  ;;  %v1437_v7 = vor.u32 %v1649_v6, %v1436_v4  ;;  %v1400_v11 = vld [vmem:[#allocation5 + $0x104] sm:$0xf]  ;;  %v402_v45 = vld [vmem:[#allocation5 + $0xc8] sm:$0x1] }
  0xc9   :  { %v1409_v59 = vor.u32 %v1642_v58, %v1408_v57  ;;  %v1432_v13 = vld [vmem:[#allocation5 + $0x1c4] sm:$0xf]  ;;  %v405_v49 = vunpack.c.l.bf16 %v402_v45  ;;  %v1496_v45 = vld [vmem:[#allocation5 + $0x1cc] sm:$0xf] }
  0xca   :  { %543 = vmatpush.bf16.msrb.mxu0 %v1309_v0  ;;  %v1659_v0 = vld [vmem:[#allocation5 + $0x2d4] sm:$0xf0]  ;;  %v1433_v16 = vor.u32 %v1648_v15, %v1432_v13  ;;  %v1500_v42 = vld [vmem:[#allocation5 + $0x1e4] sm:$0xf] }
  0xcb   :  { %839 = vmatpush.bf16.msra.mxu1 %v1485_v47  ;;  %v1477_v1 = vor.u32 %v1659_v0, %v1476_v63  ;;  %v408_v54 = vperm.slane %v405_v49, 0  ;;  %v1492_v49 = vld [vmem:[#allocation5 + $0x1b4] sm:$0xf] }
  0xcc   :  { %569 = vmatpush.bf16.msrb.mxu2 %v1317_v2  ;;  %816 = vmatpush.bf16.msrb.mxu3 %v1409_v59  ;;  %v1404_v2 = vld [vmem:[#allocation5 + $0x11c] sm:$0xf] }
  0xcd   :  { %v1405_v5 = vor.u32 %v1641_v3, %v1404_v2 }
  0xce   :  { %544 = vmatpush.bf16.msrb.mxu0 %v1297_v10  ;;  %v1473_v10 = vor.u32 %v1658_v9, %v1472_v8 }
  0xcf   :  { %840 = vmatpush.bf16.msra.mxu1 %v1481_v56 }
  0xd0   :  { %570 = vmatpush.bf16.msrb.mxu2 %v1305_v12  ;;  %817 = vmatpush.bf16.msrb.mxu3 %v1405_v5  ;;  %v1640_v12 = vld [vmem:[#allocation5 + $0x10c] sm:$0xf0] }
  0xd2   :  { %826 = vmatpush.bf16.msra.mxu0 %v1453_v21  ;;  %v1639_v21 = vld [vmem:[#allocation5 + $0xf4] sm:$0xf0] }
  0xd3   :  { %841 = vmatpush.bf16.msra.mxu1 %v1477_v1 }
  0xd6   :  { %827 = vmatpush.bf16.msra.mxu0 %v1449_v44 }
  0xd7   :  { %842 = vmatpush.bf16.msra.mxu1 %v1473_v10 }
  0xda   :  { %828 = vmatpush.bf16.msra.mxu0 %v1445_v53 }
  0xdb   :  { %843 = vmatpush.bf16.msra.mxu1 %v1469_v19 }
  0xde   :  { %829 = vmatpush.bf16.msra.mxu0 %v1441_v62 }
  0xe2   :  { %830 = vmatpush.bf16.msra.mxu0 %v1437_v7 }
  0xe6   :  { %831 = vmatpush.bf16.msra.mxu0 %v1433_v16 }
 0x148   :  { %v338_v20 = vpop.f32.mrf.mxu2 }
 0x149   :  { %v339_v22 = vadd.f32 %v338_v20, %v232_v14  ;;  %v351_v23 = vpop.f32.mrf.mxu3  ;;  %v1401_v14 = vor.u32 %v1640_v12, %v1400_v11  ;;  %v1396_v20 = vld [vmem:[#allocation5 + $0xec] sm:$0xf] }
 0x14b   :  { %v352_v24 = vadd.f32 %v351_v23, %v339_v22  ;;  %818 = vmatpush.bf16.msrb.mxu3 %v1401_v14  ;;  %v1428_v22 = vld [vmem:[#allocation5 + $0x1ac] sm:$0xf]  ;;  %v1397_v23 = vor.u32 %v1639_v21, %v1396_v20 }
 0x14d   :  { %v356_v25 = vmul.f32 1.442695, %v352_v24  ;;  %vm355_vm5 = vcmp.gt.f32.partialorder %v352_v24, 20.0 }
 0x14f   :  { %1699 = vpow2.f32 %v356_v25  ;;  %819 = vmatpush.bf16.msrb.mxu3 %v1397_v23 }
 0x150   :  { %v340_v26 = vpop.f32.mrf.mxu2 }
 0x151   :  { %v353_v27 = vpop.f32.mrf.mxu3  ;;  %v1464_v26 = vld [vmem:[#allocation5 + $0x284] sm:$0xf] }
 0x152   :  { %v1656_v27 = vld [vmem:[#allocation5 + $0x28c] sm:$0xf0] }
 0x155   :  { %v1700_v28 = vpop.eup %1699 }
 0x156   :  { %v358_v29 = vadd.f32 1.0, %v1700_v28  ;;  %v361_v30 = vmul.f32 -0.5, %v1700_v28  ;;  %v364_v32 = vand.u32 2147483647, %v1700_v28 }
 0x158   :  { %1701 = vlog2.f32 %v358_v29  ;;  %v362_v31 = vadd.f32 1.0, %v361_v30  ;;  %vm365_vm4 = vcmp.lt.f32.partialorder %v364_v32, 0.0004427343  ;;  %v1465_v29 = vor.u32 %v1656_v27, %v1464_v26  ;;  %v1392_v30 = vld [vmem:[#allocation5 + $0xd4] sm:$0xf] }
 0x159   :  { %v1424_v32 = vld [vmem:[#allocation5 + $0x194] sm:$0xf] }
 0x15a   :  { %v363_v35 = vmul.f32 %v1700_v28, %v362_v31  ;;  %v401_v28 = vld [vmem:[#allocation5 + $0xc0] sm:$0x11]  ;;  %844 = vmatpush.bf16.msra.mxu1 %v1465_v29 }
 0x15b   :  { %v1638_v31 = vld [vmem:[#allocation5 + $0xdc] sm:$0xf0]  ;;  %v404_v39 = vunpack.c.h.bf16 %v401_v28 }
 0x15d   :  { %v407_v44 = vperm.slane %v404_v39, 0  ;;  %v1504_v39 = vld [vmem:[#allocation5 + $0x1fc] sm:$0xf] }
 0x15e   :  { %v1702_v33 = vpop.eup %1701 }
 0x15f   :  { %v360_v34 = vmul.f32 0.6931472, %v1702_v33  ;;  %v1393_v33 = vor.u32 %v1638_v31, %v1392_v30  ;;  %v1516_v30 = vld [vmem:[#allocation5 + $0x244] sm:$0xf]  ;;  %v1669_v31 = vld [vmem:[#allocation5 + $0x24c] sm:$0xf0] }
 0x161   :  { %v366_v36 = vsel %vm365_vm4, %v363_v35, %v360_v34  ;;  %v1646_v34 = vld [vmem:[#allocation5 + $0x19c] sm:$0xf0]  ;;  %820 = vmatpush.bf16.msrb.mxu3 %v1393_v33  ;;  %v1512_v33 = vld [vmem:[#allocation5 + $0x22c] sm:$0xf] }
 0x162   :  { %v367_v37 = vsel %vm355_vm5, %v352_v24, %v366_v36  ;;  %v1647_v24 = vld [vmem:[#allocation5 + $0x1b4] sm:$0xf0]  ;;  %v1425_v35 = vor.u32 %v1646_v34, %v1424_v32  ;;  %v1460_v36 = vld [vmem:[#allocation5 + $0x26c] sm:$0xf]  ;;  %v1517_v32 = vor.u32 %v1669_v31, %v1516_v30  ;;  %v1672_v30 = vld [vmem:[#allocation5 + $0x2a0] sm:$0xf0] }
 0x163   :  { %v368_v38 = vpack.c.bf16 %v367_v37, %v367_v37  ;;  %v1429_v25 = vor.u32 %v1647_v24, %v1428_v22  ;;  %v1655_v37 = vld [vmem:[#allocation5 + $0x274] sm:$0xf0] }
 0x164   :  { %v1461_v40 = vor.u32 %v1655_v37, %v1460_v36  ;;  %933 = vmatpush.bf16.msra.mxu2 %v1517_v32  ;;  %v1668_v34 = vld [vmem:[#allocation5 + $0x234] sm:$0xf0]  ;;  %v1508_v36 = vld [vmem:[#allocation5 + $0x214] sm:$0xf]  ;;  %v1667_v37 = vld [vmem:[#allocation5 + $0x21c] sm:$0xf0] }
 0x165   :  { %545 = vmatmul.bf16.vlgmr.msrb.gmra.mxu0 %v368_v38  ;;  %558 = vmatmul.bf16.vlgmr.msrb.gmra.mxu1 %v368_v38  ;;  %v1524_v32 = vld [vmem:[#allocation5 + $0x280] sm:$0xf] }
 0x166   :  { %571 = vmatmul.bf16.vlgmr.msrb.gmra.mxu2 %v368_v38  ;;  %832 = vmatpush.bf16.msra.mxu0 %v1429_v25  ;;  %v403_v38 = vunpack.c.l.bf16 %v401_v28 }
 0x167   :  { %845 = vmatpush.bf16.msra.mxu1 %v1461_v40  ;;  %v1666_v40 = vld [vmem:[#allocation5 + $0x204] sm:$0xf0] }
 0x168   :  { %v406_v43 = vperm.slane %v403_v38, 0  ;;  %v1509_v38 = vor.u32 %v1667_v37, %v1508_v36  ;;  %v1505_v41 = vor.u32 %v1666_v40, %v1504_v39  ;;  %v1520_v36 = vld [vmem:[#allocation5 + $0x268] sm:$0xf]  ;;  %v1670_v37 = vld [vmem:[#allocation5 + $0x270] sm:$0xf0] }
 0x169   :  { %v1580_v40 = vld [vmem:[#allocation5 + $0x3c8] sm:$0xf] }
 0x16a   :  { %833 = vmatpush.bf16.msra.mxu0 %v1425_v35  ;;  %v1513_v35 = vor.u32 %v1668_v34, %v1512_v33  ;;  %v1671_v33 = vld [vmem:[#allocation5 + $0x288] sm:$0xf0] }
 0x16b   :  { %846 = vmatpush.bf16.msra.mxu1 %v1457_v46  ;;  %v1664_v46 = vld [vmem:[#allocation5 + $0x1d4] sm:$0xf0]  ;;  %v1525_v34 = vor.u32 %v1671_v33, %v1524_v32 }
 0x16c   :  { %934 = vmatpush.bf16.msra.mxu2 %v1513_v35  ;;  %v882_v35 = vld [vmem:[#allocation5 + $0x25c] sm:$0x1] }
 0x16d   :  { %v883_v39 = vunpack.c.l.bf16 %v882_v35 }
 0x170   :  { %935 = vmatpush.bf16.msra.mxu2 %v1509_v38  ;;  %v1521_v38 = vor.u32 %v1670_v37, %v1520_v36 }
 0x174   :  { %936 = vmatpush.bf16.msra.mxu2 %v1505_v41  ;;  %v1685_v41 = vld [vmem:[#allocation5 + $0x3d0] sm:$0xf0] }
 0x1e2   :  { %v546_v47 = vpop.f32.mrf.mxu0  ;;  %v559_v48 = vpop.f32.mrf.mxu1 }
 0x1e3   :  { %v547_v50 = vadd.f32 %v546_v47, %v406_v43  ;;  %v560_v51 = vadd.f32 %v559_v48, %v407_v44  ;;  %v1665_v43 = vld [vmem:[#allocation5 + $0x1ec] sm:$0xf0]  ;;  %v1497_v47 = vor.u32 %v1664_v46, %v1496_v45  ;;  %v666_v48 = vld [vmem:[#allocation5 + $0x314] sm:$0x1] }
 0x1e4   :  { %v1501_v44 = vor.u32 %v1665_v43, %v1500_v42  ;;  %v1581_v42 = vor.u32 %v1685_v41, %v1580_v40  ;;  %v884_v43 = vperm.slane %v883_v39, 0 }
 0x1e5   :  { %v579_v52 = vmul.f32 1.442695, %v547_v50  ;;  %v581_v53 = vmul.f32 1.442695, %v560_v51  ;;  %vm576_vm7 = vcmp.gt.f32.partialorder %v547_v50, 20.0  ;;  %vm577_vm9 = vcmp.gt.f32.partialorder %v560_v51, 20.0 }
 0x1e6   :  { %937 = vmatpush.bf16.msra.mxu2 %v1501_v44  ;;  %1121 = vmatpush.bf16.msrb.mxu0 %v1581_v42 }
 0x1e7   :  { %1703 = vpow2.f32 %v579_v52  ;;  %v667_v52 = vunpack.c.l.bf16 %v666_v48 }
 0x1e8   :  { %1705 = vpow2.f32 %v581_v53  ;;  %v1488_v53 = vld [vmem:[#allocation5 + $0x19c] sm:$0xf] }
 0x1e9   :  { %v572_v55 = vpop.f32.mrf.mxu2 }
 0x1ea   :  { %v573_v56 = vadd.f32 %v572_v55, %v408_v54  ;;  %v548_v57 = vpop.f32.mrf.mxu0  ;;  %v561_v58 = vpop.f32.mrf.mxu1  ;;  %938 = vmatpush.bf16.msra.mxu2 %v1497_v47  ;;  %v1662_v54 = vld [vmem:[#allocation5 + $0x1a4] sm:$0xf0] }
 0x1eb   :  { %v668_v57 = vperm.slane %v667_v52, 0  ;;  %v1548_v58 = vld [vmem:[#allocation5 + $0x310] sm:$0xf] }
 0x1ec   :  { %v583_v59 = vmul.f32 1.442695, %v573_v56  ;;  %vm578_vm11 = vcmp.gt.f32.partialorder %v573_v56, 20.0 }
 0x1ed   :  { %v1704_v60 = vpop.eup %1703 }
 0x1ee   :  { %v1706_v61 = vpop.eup %1705  ;;  %1707 = vpow2.f32 %v583_v59  ;;  %v585_v62 = vadd.f32 1.0, %v1704_v60  ;;  %v588_v0 = vmul.f32 -0.5, %v1704_v60  ;;  %v591_v6 = vand.u32 2147483647, %v1704_v60  ;;  %v1677_v59 = vld [vmem:[#allocation5 + $0x318] sm:$0xf0] }
 0x1ef   :  { %v594_v63 = vadd.f32 1.0, %v1706_v61  ;;  %v597_v1 = vmul.f32 -0.5, %v1706_v61  ;;  %v600_v7 = vand.u32 2147483647, %v1706_v61 }
 0x1f0   :  { %1709 = vlog2.f32 %v585_v62  ;;  %v589_v3 = vadd.f32 1.0, %v588_v0  ;;  %vm592_vm6 = vcmp.lt.f32.partialorder %v591_v6, 0.0004427343 }
 0x1f1   :  { %1711 = vlog2.f32 %v594_v63  ;;  %v574_v2 = vpop.f32.mrf.mxu2  ;;  %v598_v5 = vadd.f32 1.0, %v597_v1  ;;  %vm601_vm8 = vcmp.lt.f32.partialorder %v600_v7, 0.0004427343 }
 0x1f2   :  { %v590_v13 = vmul.f32 %v1704_v60, %v589_v3 }
 0x1f3   :  { %v599_v15 = vmul.f32 %v1706_v61, %v598_v5  ;;  %v1549_v61 = vor.u32 %v1677_v59, %v1548_v58  ;;  %v1576_v59 = vld [vmem:[#allocation5 + $0x3b0] sm:$0xf] }
 0x1f4   :  { %v1708_v4 = vpop.eup %1707 }
 0x1f5   :  { %v603_v8 = vadd.f32 1.0, %v1708_v4  ;;  %v606_v10 = vmul.f32 -0.5, %v1708_v4  ;;  %v609_v21 = vand.u32 2147483647, %v1708_v4  ;;  %1027 = vmatpush.bf16.msra.mxu3 %v1549_v61 }
 0x1f6   :  { %v1710_v9 = vpop.eup %1709 }
 0x1f7   :  { %v1712_v11 = vpop.eup %1711  ;;  %1713 = vlog2.f32 %v603_v8  ;;  %v587_v12 = vmul.f32 0.6931472, %v1710_v9  ;;  %v607_v18 = vadd.f32 1.0, %v606_v10  ;;  %vm610_vm10 = vcmp.lt.f32.partialorder %v609_v21, 0.0004427343 }
 0x1f8   :  { %v596_v14 = vmul.f32 0.6931472, %v1712_v11  ;;  %v1675_v21 = vld [vmem:[#allocation5 + $0x2e8] sm:$0xf0] }
 0x1f9   :  { %v593_v16 = vsel %vm592_vm6, %v590_v13, %v587_v12  ;;  %v608_v26 = vmul.f32 %v1708_v4, %v607_v18  ;;  %v1676_v18 = vld [vmem:[#allocation5 + $0x300] sm:$0xf0] }
 0x1fa   :  { %v602_v17 = vsel %vm601_vm8, %v599_v15, %v596_v14  ;;  %v612_v19 = vsel %vm576_vm7, %v547_v50, %v593_v16  ;;  %v1663_v50 = vld [vmem:[#allocation5 + $0x1bc] sm:$0xf0] }
 0x1fb   :  { %v613_v20 = vsel %vm577_vm9, %v560_v51, %v602_v17  ;;  %v615_v22 = vpack.c.bf16 %v612_v19, %v612_v19  ;;  %v1493_v51 = vor.u32 %v1663_v50, %v1492_v49  ;;  %v1544_v17 = vld [vmem:[#allocation5 + $0x2f8] sm:$0xf] }
 0x1fc   :  { %v616_v23 = vpack.c.bf16 %v613_v20, %v613_v20  ;;  %v1545_v19 = vor.u32 %v1676_v18, %v1544_v17  ;;  %v1540_v20 = vld [vmem:[#allocation5 + $0x2e0] sm:$0xf] }
 0x1fd   :  { %v1714_v24 = vpop.eup %1713  ;;  %821 = vmatmul.bf16.vlgmr.msrb.gmra.mxu3 %v615_v22  ;;  %939 = vmatpush.bf16.msra.mxu2 %v1493_v51  ;;  %v1541_v22 = vor.u32 %v1675_v21, %v1540_v20 }
 0x1fe   :  { %v605_v25 = vmul.f32 0.6931472, %v1714_v24  ;;  %834 = vmatmul.bf16.vlgmr.msra.gmra.mxu0 %v616_v23  ;;  %1028 = vmatpush.bf16.msra.mxu3 %v1545_v19  ;;  %v1536_v23 = vld [vmem:[#allocation5 + $0x2c8] sm:$0xf]  ;;  %v1674_v24 = vld [vmem:[#allocation5 + $0x2d0] sm:$0xf0] }
 0x200   :  { %v611_v27 = vsel %vm610_vm10, %v608_v26, %v605_v25  ;;  %v1537_v25 = vor.u32 %v1674_v24, %v1536_v23  ;;  %v1532_v26 = vld [vmem:[#allocation5 + $0x2b0] sm:$0xf] }
 0x201   :  { %v614_v28 = vsel %vm578_vm11, %v573_v56, %v611_v27  ;;  %v1489_v56 = vor.u32 %v1662_v54, %v1488_v53  ;;  %v1673_v27 = vld [vmem:[#allocation5 + $0x2b8] sm:$0xf0] }
 0x202   :  { %v617_v29 = vpack.c.bf16 %v614_v28, %v614_v28  ;;  %1029 = vmatpush.bf16.msra.mxu3 %v1541_v22  ;;  %v1533_v28 = vor.u32 %v1673_v27, %v1532_v26 }
 0x203   :  { %940 = vmatpush.bf16.msra.mxu2 %v1489_v56 }
 0x204   :  { %847 = vmatmul.bf16.vlgmr.msra.gmra.mxu1 %v617_v29  ;;  %v1528_v29 = vld [vmem:[#allocation5 + $0x298] sm:$0xf] }
 0x205   :  { %v1529_v31 = vor.u32 %v1672_v30, %v1528_v29 }
 0x206   :  { %1030 = vmatpush.bf16.msra.mxu3 %v1537_v25 }
 0x20a   :  { %1031 = vmatpush.bf16.msra.mxu3 %v1533_v28 }
 0x20e   :  { %1032 = vmatpush.bf16.msra.mxu3 %v1529_v31 }
 0x212   :  { %1033 = vmatpush.bf16.msra.mxu3 %v1525_v34  ;;  %v1070_v34 = vld [vmem:[#allocation5 + $0x3e0] sm:$0x1] }
 0x213   :  { %v1071_v35 = vunpack.c.l.bf16 %v1070_v34 }
 0x215   :  { %v1072_v36 = vperm.slane %v1071_v35, 0 }
 0x216   :  { %1034 = vmatpush.bf16.msra.mxu3 %v1521_v38 }
 0x27b   :  { %v835_v55 = vpop.f32.mrf.mxu0 }
 0x280   :  { %v822_v60 = vpop.f32.mrf.mxu3 }
 0x281   :  { %v823_v62 = vadd.f32 %v822_v60, %v668_v57  ;;  %v848_v63 = vpop.f32.mrf.mxu1  ;;  %v1684_v60 = vld [vmem:[#allocation5 + $0x3b8] sm:$0xf0] }
 0x282   :  { %v1577_v61 = vor.u32 %v1684_v60, %v1576_v59 }
 0x283   :  { %v836_v0 = vadd.f32 %v835_v55, %v823_v62  ;;  %v837_v1 = vpop.f32.mrf.mxu0  ;;  %v1572_v62 = vld [vmem:[#allocation5 + $0x398] sm:$0xf] }
 0x284   :  { %1122 = vmatpush.bf16.msrb.mxu0 %v1577_v61  ;;  %v1568_v1 = vld [vmem:[#allocation5 + $0x380] sm:$0xf] }
 0x285   :  { %v849_v2 = vadd.f32 %v848_v63, %v836_v0  ;;  %v1683_v63 = vld [vmem:[#allocation5 + $0x3a0] sm:$0xf0] }
 0x286   :  { %v1573_v0 = vor.u32 %v1683_v63, %v1572_v62 }
 0x287   :  { %v853_v3 = vmul.f32 1.442695, %v849_v2  ;;  %vm852_vm13 = vcmp.gt.f32.partialorder %v849_v2, 20.0 }
 0x288   :  { %v824_v4 = vpop.f32.mrf.mxu3  ;;  %1123 = vmatpush.bf16.msrb.mxu0 %v1573_v0 }
 0x289   :  { %1715 = vpow2.f32 %v853_v3  ;;  %v850_v5 = vpop.f32.mrf.mxu1  ;;  %v1564_v4 = vld [vmem:[#allocation5 + $0x368] sm:$0xf] }
 0x28a   :  { %v1681_v5 = vld [vmem:[#allocation5 + $0x370] sm:$0xf0] }
 0x28f   :  { %v1716_v6 = vpop.eup %1715 }
 0x290   :  { %v855_v7 = vadd.f32 1.0, %v1716_v6  ;;  %v858_v8 = vmul.f32 -0.5, %v1716_v6  ;;  %v861_v10 = vand.u32 2147483647, %v1716_v6 }
 0x292   :  { %1717 = vlog2.f32 %v855_v7  ;;  %v859_v9 = vadd.f32 1.0, %v858_v8  ;;  %vm862_vm12 = vcmp.lt.f32.partialorder %v861_v10, 0.0004427343  ;;  %v1560_v7 = vld [vmem:[#allocation5 + $0x350] sm:$0xf] }
 0x293   :  { %v1680_v8 = vld [vmem:[#allocation5 + $0x358] sm:$0xf0]  ;;  %v1556_v10 = vld [vmem:[#allocation5 + $0x338] sm:$0xf] }
 0x294   :  { %v860_v13 = vmul.f32 %v1716_v6, %v859_v9  ;;  %v1565_v6 = vor.u32 %v1681_v5, %v1564_v4  ;;  %v1561_v9 = vor.u32 %v1680_v8, %v1560_v7 }
 0x298   :  { %v1718_v11 = vpop.eup %1717 }
 0x299   :  { %v857_v12 = vmul.f32 0.6931472, %v1718_v11  ;;  %v1679_v11 = vld [vmem:[#allocation5 + $0x340] sm:$0xf0] }
 0x29b   :  { %v863_v14 = vsel %vm862_vm12, %v860_v13, %v857_v12  ;;  %v1557_v12 = vor.u32 %v1679_v11, %v1556_v10  ;;  %v976_v13 = vld [vmem:[#allocation5 + $0x328] sm:$0x1] }
 0x29c   :  { %v864_v15 = vsel %vm852_vm13, %v849_v2, %v863_v14  ;;  %v1682_v2 = vld [vmem:[#allocation5 + $0x388] sm:$0xf0]  ;;  %v1552_v14 = vld [vmem:[#allocation5 + $0x320] sm:$0xf]  ;;  %v977_v17 = vunpack.c.l.bf16 %v976_v13 }
 0x29d   :  { %v865_v16 = vpack.c.bf16 %v864_v15, %v864_v15  ;;  %v1569_v3 = vor.u32 %v1682_v2, %v1568_v1  ;;  %v1678_v15 = vld [vmem:[#allocation5 + $0x328] sm:$0xf0] }
 0x29e   :  { %v978_v18 = vperm.slane %v977_v17, 0 }
 0x29f   :  { %941 = vmatmul.bf16.vlgmr.msra.gmra.mxu2 %v865_v16  ;;  %1124 = vmatpush.bf16.msrb.mxu0 %v1569_v3  ;;  %v1553_v16 = vor.u32 %v1678_v15, %v1552_v14 }
 0x2a3   :  { %1125 = vmatpush.bf16.msrb.mxu0 %v1565_v6 }
 0x2a7   :  { %1126 = vmatpush.bf16.msrb.mxu0 %v1561_v9 }
 0x2ab   :  { %1127 = vmatpush.bf16.msrb.mxu0 %v1557_v12 }
 0x2af   :  { %1128 = vmatpush.bf16.msrb.mxu0 %v1553_v16 }
 0x322   :  { %v942_v44 = vpop.f32.mrf.mxu2 }
 0x323   :  { %v943_v45 = vadd.f32 %v942_v44, %v884_v43 }
 0x325   :  { %v947_v46 = vmul.f32 1.442695, %v943_v45  ;;  %vm946_vm15 = vcmp.gt.f32.partialorder %v943_v45, 20.0 }
 0x327   :  { %1719 = vpow2.f32 %v947_v46 }
 0x32a   :  { %v944_v47 = vpop.f32.mrf.mxu2 }
 0x32d   :  { %v1720_v48 = vpop.eup %1719 }
 0x32e   :  { %v949_v49 = vadd.f32 1.0, %v1720_v48  ;;  %v952_v50 = vmul.f32 -0.5, %v1720_v48  ;;  %v955_v52 = vand.u32 2147483647, %v1720_v48 }
 0x330   :  { %1721 = vlog2.f32 %v949_v49  ;;  %v953_v51 = vadd.f32 1.0, %v952_v50  ;;  %vm956_vm14 = vcmp.lt.f32.partialorder %v955_v52, 0.0004427343 }
 0x332   :  { %v954_v55 = vmul.f32 %v1720_v48, %v953_v51 }
 0x336   :  { %v1722_v53 = vpop.eup %1721 }
 0x337   :  { %v951_v54 = vmul.f32 0.6931472, %v1722_v53 }
 0x339   :  { %v957_v56 = vsel %vm956_vm14, %v954_v55, %v951_v54 }
 0x33a   :  { %v958_v57 = vsel %vm946_vm15, %v943_v45, %v957_v56 }
 0x33b   :  { %v959_v58 = vpack.c.bf16 %v958_v57, %v958_v57 }
 0x33d   :  { %1035 = vmatmul.bf16.vlgmr.msra.gmra.mxu3 %v959_v58 }
 0x3c0   :  { %v1036_v19 = vpop.f32.mrf.mxu3 }
 0x3c1   :  { %v1037_v20 = vadd.f32 %v1036_v19, %v978_v18 }
 0x3c3   :  { %v1041_v21 = vmul.f32 1.442695, %v1037_v20  ;;  %vm1040_vm1 = vcmp.gt.f32.partialorder %v1037_v20, 20.0 }
 0x3c5   :  { %1723 = vpow2.f32 %v1041_v21 }
 0x3c8   :  { %v1038_v22 = vpop.f32.mrf.mxu3 }
 0x3cb   :  { %v1724_v23 = vpop.eup %1723 }
 0x3cc   :  { %v1043_v24 = vadd.f32 1.0, %v1724_v23  ;;  %v1046_v25 = vmul.f32 -0.5, %v1724_v23  ;;  %v1049_v27 = vand.u32 2147483647, %v1724_v23 }
 0x3ce   :  { %1725 = vlog2.f32 %v1043_v24  ;;  %v1047_v26 = vadd.f32 1.0, %v1046_v25  ;;  %vm1050_vm0 = vcmp.lt.f32.partialorder %v1049_v27, 0.0004427343 }
 0x3d0   :  { %v1048_v30 = vmul.f32 %v1724_v23, %v1047_v26 }
 0x3d4   :  { %v1726_v28 = vpop.eup %1725 }
 0x3d5   :  { %v1045_v29 = vmul.f32 0.6931472, %v1726_v28 }
 0x3d7   :  { %v1051_v31 = vsel %vm1050_vm0, %v1048_v30, %v1045_v29 }
 0x3d8   :  { %v1052_v32 = vsel %vm1040_vm1, %v1037_v20, %v1051_v31 }
 0x3d9   :  { %v1053_v33 = vpack.c.bf16 %v1052_v32, %v1052_v32 }
 0x3db   :  { %1129 = vmatmul.bf16.vlgmr.msrb.gmra.mxu0 %v1053_v33 }
 0x458   :  { %v1130_v37 = vpop.f32.mrf.mxu0 }
 0x459   :  { %v1131_v38 = vadd.f32 %v1130_v37, %v1072_v36 }
 0x45b   :  { %v1135_v39 = vmul.f32 1.442695, %v1131_v38  ;;  %vm1134_vm3 = vcmp.gt.f32.partialorder %v1131_v38, 20.0 }
 0x45d   :  { %1727 = vpow2.f32 %v1135_v39 }
 0x460   :  { %v1132_v40 = vpop.f32.mrf.mxu0 }
 0x463   :  { %v1728_v41 = vpop.eup %1727 }
 0x464   :  { %v1137_v42 = vadd.f32 1.0, %v1728_v41  ;;  %v1140_v43 = vmul.f32 -0.5, %v1728_v41  ;;  %v1143_v45 = vand.u32 2147483647, %v1728_v41 }
 0x466   :  { %1729 = vlog2.f32 %v1137_v42  ;;  %v1141_v44 = vadd.f32 1.0, %v1140_v43  ;;  %vm1144_vm2 = vcmp.lt.f32.partialorder %v1143_v45, 0.0004427343 }
 0x468   :  { %v1142_v48 = vmul.f32 %v1728_v41, %v1141_v44 }
 0x46c   :  { %v1730_v46 = vpop.eup %1729 }
 0x46d   :  { %v1139_v47 = vmul.f32 0.6931472, %v1730_v46 }
 0x46f   :  { %v1145_v49 = vsel %vm1144_vm2, %v1142_v48, %v1139_v47 }
 0x470   :  { %v1146_v50 = vsel %vm1134_vm3, %v1131_v38, %v1145_v49 }
 0x471   :  { %1147 = vst [vmem:[#allocation7] sm:$0xff] %v1146_v50 }
 0x472   :  { %1158 = dma.vmem_to_hbm [thread:$0]  %s1154_s1, 128, %s1156_s23, [#allocation4]  }
 0x473   :  { %1807 = dma.done.wait [#allocation4], 128  }
 0x474   :  { %1808 = vsyncadd [#allocation4], 4294967168 }
 0x475   :  { %1163 = vsyncpa [#allocation3], 1 }
 0x476   :  { %1164 = vsyncpa [#allocation6], 1 }
 0x477   :  { %1165 = vsyncpa [#allocation4], 1 }

</bundles_post_ra>
